<compile_context>
chip_gen: v7x
topology: tpu7x:2x2x1
jax: 0.10.0
libtpu: 0.0.40
codegen_flags: <defaults>
</compile_context>

<pallas_src>
import functools
import math

import jax
import jax.numpy as jnp
from jax import lax
from jax.experimental import pallas as pl
from jax.experimental.pallas import tpu as pltpu


def _patch_st_kernel(p_ref, w1t_ref, aff_ref, w2t_ref, b2_ref, o_ref, *,
                     n_taps, negative_slope):
    """One batch element: fused conv1 + BN + LeakyReLU + conv2.

    p_ref   : (1, K2, L2, C*K1)  unfolded input patches
    w1t_ref : (C*K1, 64)         conv1 weight, pre-transposed
    aff_ref : (2, 64)            [bn_scale; bn_shift] (conv1 bias folded in)
    w2t_ref : (K2, 64, E)        conv2 weight, pre-transposed per tap
    b2_ref  : (1, E)             conv2 bias
    o_ref   : (1, L2, E)         output, already in 'b s c' layout
    """
    w1t = w1t_ref[...]                     # (C*K1, 64)
    aff = aff_ref[...]                     # (2, 64)
    scale = aff[0:1, :]                    # (1, 64)
    shift = aff[1:2, :]                    # (1, 64)

    acc = jnp.zeros(o_ref.shape[1:], jnp.float32)          # (L2, E)
    for k2 in range(n_taps):               # K2 = 15, fully unrolled
        # conv1 at exactly the positions tap k2 of conv2 needs: one matmul.
        h = jnp.dot(p_ref[0, k2], w1t, preferred_element_type=jnp.float32)
        # BatchNorm1d (inference) + conv1 bias, folded to a per-channel affine.
        h = h * scale + shift
        # LeakyReLU(0.2)
        h = jnp.where(h > 0, h, negative_slope * h)
        # conv2 contribution of tap k2.
        acc = acc + jnp.dot(h, w2t_ref[k2], preferred_element_type=jnp.float32)

    o_ref[0] = (acc + b2_ref[...]).astype(o_ref.dtype)


def patch_st_embedding(x, params, *, k1=15, s1=8, k2=15, s2=8,
                       eps=1e-5, negative_slope=0.2):
    """x: (B, C, L) float32.  Returns (B, L2, emb) == Rearrange('b c s -> b s c')."""
    B, C, L = x.shape
    c_mid = params["w1"].shape[0]          # 64
    E = params["w2"].shape[0]              # emb_size
    L1 = (L - k1) // s1 + 1
    assert L1 >= k2, "input sequence too short for the second Conv1d"
    L2 = (L1 - k2) // s2 + 1
    CK1 = C * k1

    # ---------- host-side layout plumbing (no kernel-side relayouts) --------
    # Unfold: P[b, j2, t, c*k1 + j1] = x[b, c, s1*s2*t + s1*j2 + j1]
    t = jnp.arange(L2)
    j2 = jnp.arange(k2)
    j1 = jnp.arange(k1)
    pos = (s1 * s2) * t[None, :, None] + s1 * j2[:, None, None] + j1[None, None, :]
    patches = jnp.transpose(x[:, :, pos], (0, 2, 3, 1, 4)).reshape(B, k2, L2, CK1)

    # Pre-transposed weights (no in-kernel .T).
    w1t = params["w1"].reshape(c_mid, CK1).T                 # (C*K1, 64)
    w2t = jnp.transpose(params["w2"], (2, 1, 0))             # (K2, 64, E)

    # conv1 bias + BatchNorm (inference, running stats) folded to one affine.
    inv_std = 1.0 / jnp.sqrt(params["bn_var"] + eps)
    scale = params["bn_gamma"] * inv_std                     # (64,)
    shift = scale * (params["b1"] - params["bn_mean"]) + params["bn_beta"]
    affine = jnp.stack([scale, shift], axis=0).astype(jnp.float32)  # (2, 64)

    b2 = params["b2"].reshape(1, E).astype(jnp.float32)

    kernel = functools.partial(_patch_st_kernel, n_taps=k2,
                               negative_slope=negative_slope)

    return pl.pallas_call(
        kernel,
        out_shape=jax.ShapeDtypeStruct((B, L2, E), jnp.float32),
        grid=(B,),
        in_specs=[
            pl.BlockSpec((1, k2, L2, CK1), lambda b: (b, 0, 0, 0)),
            pl.BlockSpec((CK1, c_mid), lambda b: (0, 0)),
            pl.BlockSpec((2, c_mid), lambda b: (0, 0)),
            pl.BlockSpec((k2, c_mid, E), lambda b: (0, 0, 0)),
            pl.BlockSpec((1, E), lambda b: (0, 0)),
        ],
        out_specs=pl.BlockSpec((1, L2, E), lambda b: (b, 0, 0)),
        compiler_params=pltpu.CompilerParams(
            dimension_semantics=("parallel",)),
    )(patches, w1t, affine, w2t, b2)


def reference_forward(x, params, *, s1=8, s2=8, eps=1e-5, negative_slope=0.2):
    """Pure-JAX reference mirroring the PyTorch module (inference mode)."""
    y = lax.conv_general_dilated(
        x, params["w1"], window_strides=(s1,), padding="VALID",
        dimension_numbers=("NCH", "OIH", "NCH"))
    y = y + params["b1"][None, :, None]
    inv_std = 1.0 / jnp.sqrt(params["bn_var"] + eps)
    y = (y - params["bn_mean"][None, :, None]) * (params["bn_gamma"] * inv_std)[None, :, None] \
        + params["bn_beta"][None, :, None]
    y = jnp.where(y > 0, y, negative_slope * y)
    y = lax.conv_general_dilated(
        y, params["w2"], window_strides=(s2,), padding="VALID",
        dimension_numbers=("NCH", "OIH", "NCH"))
    y = y + params["b2"][None, :, None]
    return jnp.transpose(y, (0, 2, 1))     # Rearrange('b c s -> b s c')


def init_params(key, n_channels=16, emb_size=32, k1=15, k2=15):
    """Deterministic init mirroring PyTorch defaults (plus non-trivial BN
    running stats so the BatchNorm path is actually exercised)."""
    ks = jax.random.split(key, 8)

    def conv_init(kw, kb, c_out, c_in, k):
        bound = 1.0 / math.sqrt(c_in * k)
        w = jax.random.uniform(kw, (c_out, c_in, k), jnp.float32, -bound, bound)
        b = jax.random.uniform(kb, (c_out,), jnp.float32, -bound, bound)
        return w, b

    w1, b1 = conv_init(ks[0], ks[1], 64, n_channels, k1)
    w2, b2 = conv_init(ks[2], ks[3], emb_size, 64, k2)
    return dict(
        w1=w1, b1=b1, w2=w2, b2=b2,
        bn_gamma=jax.random.uniform(ks[4], (64,), jnp.float32, 0.8, 1.2),
        bn_beta=0.1 * jax.random.normal(ks[5], (64,), jnp.float32),
        bn_mean=0.1 * jax.random.normal(ks[6], (64,), jnp.float32),
        bn_var=jax.random.uniform(ks[7], (64,), jnp.float32, 0.5, 1.5),
    )


if __name__ == "__main__":
    # Shapes consistent with the module defaults: n_channels=16, kernel 15,
    # stride 8 twice -> L=1000 gives L1=124, L2=14.  emb_size=32.
    B, C, L, E = 2, 16, 1000, 32

    key = jax.random.PRNGKey(0)
    kx, kp = jax.random.split(key)
    x = jax.random.normal(kx, (B, C, L), jnp.float32)
    params = init_params(kp, n_channels=C, emb_size=E)

    out = patch_st_embedding(x, params)
    out = jax.block_until_ready(out)

    ref = reference_forward(x, params)
    L2_expected = (((L - 15) // 8 + 1) - 15) // 8 + 1
    assert out.shape == (B, L2_expected, E)
    assert out.shape == ref.shape
    assert bool(jnp.all(jnp.isfinite(out)))
    max_err = float(jnp.max(jnp.abs(out - ref)))
    assert max_err < 5e-2, f"mismatch vs reference: {max_err}"
    print("KERNEL_OK")
</pallas_src>

<mosaic_0001>
module attributes {stable_mosaic.version = 11 : i64} {
  func.func @_patch_st_kernel(%arg0: i32, %arg1: memref<1x15x14x240xf32, #tpu.memory_space<vmem>>, %arg2: memref<240x64xf32, #tpu.memory_space<vmem>>, %arg3: memref<2x64xf32, #tpu.memory_space<vmem>>, %arg4: memref<15x64x32xf32, #tpu.memory_space<vmem>>, %arg5: memref<1x32xf32, #tpu.memory_space<vmem>>, %arg6: memref<1x14x32xf32, #tpu.memory_space<vmem>>) attributes {dimension_semantics = [#tpu.dimension_semantics<parallel>], iteration_bounds = array<i64: 2>, scalar_prefetch = 0 : i64, scratch_operands = 0 : i64, tpu.core_type = #tpu.core_type<tc>, window_params = [{transform_indices = @transform_0, window_bounds = array<i64: 1, 15, 14, 240>}, {pipeline_mode = #tpu.pipeline_mode<synchronous>, transform_indices = @transform_1, window_bounds = array<i64: 240, 64>}, {pipeline_mode = #tpu.pipeline_mode<synchronous>, transform_indices = @transform_2, window_bounds = array<i64: 2, 64>}, {pipeline_mode = #tpu.pipeline_mode<synchronous>, transform_indices = @transform_3, window_bounds = array<i64: 15, 64, 32>}, {pipeline_mode = #tpu.pipeline_mode<synchronous>, transform_indices = @transform_4, window_bounds = array<i64: 1, 32>}, {transform_indices = @transform_5, window_bounds = array<i64: 1, 14, 32>}]} {
    %c0 = arith.constant 0 : index
    %c0_0 = arith.constant 0 : index
    %0 = vector.load %arg2[%c0, %c0_0] : memref<240x64xf32, #tpu.memory_space<vmem>>, vector<240x64xf32>
    %c0_1 = arith.constant 0 : index
    %c0_2 = arith.constant 0 : index
    %1 = vector.load %arg3[%c0_1, %c0_2] : memref<2x64xf32, #tpu.memory_space<vmem>>, vector<2x64xf32>
    %2 = vector.extract_strided_slice %1 {offsets = [0, 0], sizes = [1, 64], strides = [1, 1]} : vector<2x64xf32> to vector<1x64xf32>
    %3 = vector.extract_strided_slice %1 {offsets = [1, 0], sizes = [1, 64], strides = [1, 1]} : vector<2x64xf32> to vector<1x64xf32>
    %cst = arith.constant 0.000000e+00 : f32
    %4 = vector.broadcast %cst : f32 to vector<14x32xf32>
    %c0_3 = arith.constant 0 : index
    %c0_4 = arith.constant 0 : index
    %c0_5 = arith.constant 0 : index
    %c0_6 = arith.constant 0 : index
    %5 = vector.load %arg1[%c0_3, %c0_4, %c0_5, %c0_6] : memref<1x15x14x240xf32, #tpu.memory_space<vmem>>, vector<1x1x14x240xf32>
    %6 = vector.shape_cast %5 : vector<1x1x14x240xf32> to vector<14x240xf32>
    %cst_7 = arith.constant dense<0.000000e+00> : vector<14x64xf32>
    %7 = tpu.matmul %6, %0, %cst_7 {dimension_numbers = #tpu.dot_dimension_numbers<[1], [0], [0], [1], [0, 0, 1, 1], [], []>} : vector<14x240xf32>, vector<240x64xf32>, vector<14x64xf32> -> vector<14x64xf32>
    %8 = vector.broadcast %2 : vector<1x64xf32> to vector<14x64xf32>
    %9 = arith.mulf %7, %8 : vector<14x64xf32>
    %10 = vector.broadcast %3 : vector<1x64xf32> to vector<14x64xf32>
    %11 = arith.addf %9, %10 : vector<14x64xf32>
    %cst_8 = arith.constant 0.000000e+00 : f32
    %12 = vector.broadcast %cst_8 : f32 to vector<14x64xf32>
    %13 = arith.cmpf ogt, %11, %12 : vector<14x64xf32>
    %cst_9 = arith.constant 2.000000e-01 : f32
    %14 = vector.broadcast %cst_9 : f32 to vector<14x64xf32>
    %15 = arith.mulf %14, %11 : vector<14x64xf32>
    %16 = arith.select %13, %11, %15 : vector<14x64xi1>, vector<14x64xf32>
    %c0_10 = arith.constant 0 : index
    %c0_11 = arith.constant 0 : index
    %c0_12 = arith.constant 0 : index
    %17 = vector.load %arg4[%c0_10, %c0_11, %c0_12] : memref<15x64x32xf32, #tpu.memory_space<vmem>>, vector<1x64x32xf32>
    %18 = vector.shape_cast %17 : vector<1x64x32xf32> to vector<64x32xf32>
    %cst_13 = arith.constant dense<0.000000e+00> : vector<14x32xf32>
    %19 = tpu.matmul %16, %18, %cst_13 {dimension_numbers = #tpu.dot_dimension_numbers<[1], [0], [0], [1], [0, 0, 1, 1], [], []>} : vector<14x64xf32>, vector<64x32xf32>, vector<14x32xf32> -> vector<14x32xf32>
    %20 = arith.addf %4, %19 : vector<14x32xf32>
    %c0_14 = arith.constant 0 : index
    %c1 = arith.constant 1 : index
    %c0_15 = arith.constant 0 : index
    %c0_16 = arith.constant 0 : index
    %21 = vector.load %arg1[%c0_14, %c1, %c0_15, %c0_16] : memref<1x15x14x240xf32, #tpu.memory_space<vmem>>, vector<1x1x14x240xf32>
    %22 = vector.shape_cast %21 : vector<1x1x14x240xf32> to vector<14x240xf32>
    %cst_17 = arith.constant dense<0.000000e+00> : vector<14x64xf32>
    %23 = tpu.matmul %22, %0, %cst_17 {dimension_numbers = #tpu.dot_dimension_numbers<[1], [0], [0], [1], [0, 0, 1, 1], [], []>} : vector<14x240xf32>, vector<240x64xf32>, vector<14x64xf32> -> vector<14x64xf32>
    %24 = vector.broadcast %2 : vector<1x64xf32> to vector<14x64xf32>
    %25 = arith.mulf %23, %24 : vector<14x64xf32>
    %26 = vector.broadcast %3 : vector<1x64xf32> to vector<14x64xf32>
    %27 = arith.addf %25, %26 : vector<14x64xf32>
    %cst_18 = arith.constant 0.000000e+00 : f32
    %28 = vector.broadcast %cst_18 : f32 to vector<14x64xf32>
    %29 = arith.cmpf ogt, %27, %28 : vector<14x64xf32>
    %cst_19 = arith.constant 2.000000e-01 : f32
    %30 = vector.broadcast %cst_19 : f32 to vector<14x64xf32>
    %31 = arith.mulf %30, %27 : vector<14x64xf32>
    %32 = arith.select %29, %27, %31 : vector<14x64xi1>, vector<14x64xf32>
    %c1_20 = arith.constant 1 : index
    %c0_21 = arith.constant 0 : index
    %c0_22 = arith.constant 0 : index
    %33 = vector.load %arg4[%c1_20, %c0_21, %c0_22] : memref<15x64x32xf32, #tpu.memory_space<vmem>>, vector<1x64x32xf32>
    %34 = vector.shape_cast %33 : vector<1x64x32xf32> to vector<64x32xf32>
    %cst_23 = arith.constant dense<0.000000e+00> : vector<14x32xf32>
    %35 = tpu.matmul %32, %34, %cst_23 {dimension_numbers = #tpu.dot_dimension_numbers<[1], [0], [0], [1], [0, 0, 1, 1], [], []>} : vector<14x64xf32>, vector<64x32xf32>, vector<14x32xf32> -> vector<14x32xf32>
    %36 = arith.addf %20, %35 : vector<14x32xf32>
    %c0_24 = arith.constant 0 : index
    %c2 = arith.constant 2 : index
    %c0_25 = arith.constant 0 : index
    %c0_26 = arith.constant 0 : index
    %37 = vector.load %arg1[%c0_24, %c2, %c0_25, %c0_26] : memref<1x15x14x240xf32, #tpu.memory_space<vmem>>, vector<1x1x14x240xf32>
    %38 = vector.shape_cast %37 : vector<1x1x14x240xf32> to vector<14x240xf32>
    %cst_27 = arith.constant dense<0.000000e+00> : vector<14x64xf32>
    %39 = tpu.matmul %38, %0, %cst_27 {dimension_numbers = #tpu.dot_dimension_numbers<[1], [0], [0], [1], [0, 0, 1, 1], [], []>} : vector<14x240xf32>, vector<240x64xf32>, vector<14x64xf32> -> vector<14x64xf32>
    %40 = vector.broadcast %2 : vector<1x64xf32> to vector<14x64xf32>
    %41 = arith.mulf %39, %40 : vector<14x64xf32>
    %42 = vector.broadcast %3 : vector<1x64xf32> to vector<14x64xf32>
    %43 = arith.addf %41, %42 : vector<14x64xf32>
    %cst_28 = arith.constant 0.000000e+00 : f32
    %44 = vector.broadcast %cst_28 : f32 to vector<14x64xf32>
    %45 = arith.cmpf ogt, %43, %44 : vector<14x64xf32>
    %cst_29 = arith.constant 2.000000e-01 : f32
    %46 = vector.broadcast %cst_29 : f32 to vector<14x64xf32>
    %47 = arith.mulf %46, %43 : vector<14x64xf32>
    %48 = arith.select %45, %43, %47 : vector<14x64xi1>, vector<14x64xf32>
    %c2_30 = arith.constant 2 : index
    %c0_31 = arith.constant 0 : index
    %c0_32 = arith.constant 0 : index
    %49 = vector.load %arg4[%c2_30, %c0_31, %c0_32] : memref<15x64x32xf32, #tpu.memory_space<vmem>>, vector<1x64x32xf32>
    %50 = vector.shape_cast %49 : vector<1x64x32xf32> to vector<64x32xf32>
    %cst_33 = arith.constant dense<0.000000e+00> : vector<14x32xf32>
    %51 = tpu.matmul %48, %50, %cst_33 {dimension_numbers = #tpu.dot_dimension_numbers<[1], [0], [0], [1], [0, 0, 1, 1], [], []>} : vector<14x64xf32>, vector<64x32xf32>, vector<14x32xf32> -> vector<14x32xf32>
    %52 = arith.addf %36, %51 : vector<14x32xf32>
    %c0_34 = arith.constant 0 : index
    %c3 = arith.constant 3 : index
    %c0_35 = arith.constant 0 : index
    %c0_36 = arith.constant 0 : index
    %53 = vector.load %arg1[%c0_34, %c3, %c0_35, %c0_36] : memref<1x15x14x240xf32, #tpu.memory_space<vmem>>, vector<1x1x14x240xf32>
    %54 = vector.shape_cast %53 : vector<1x1x14x240xf32> to vector<14x240xf32>
    %cst_37 = arith.constant dense<0.000000e+00> : vector<14x64xf32>
    %55 = tpu.matmul %54, %0, %cst_37 {dimension_numbers = #tpu.dot_dimension_numbers<[1], [0], [0], [1], [0, 0, 1, 1], [], []>} : vector<14x240xf32>, vector<240x64xf32>, vector<14x64xf32> -> vector<14x64xf32>
    %56 = vector.broadcast %2 : vector<1x64xf32> to vector<14x64xf32>
    %57 = arith.mulf %55, %56 : vector<14x64xf32>
    %58 = vector.broadcast %3 : vector<1x64xf32> to vector<14x64xf32>
    %59 = arith.addf %57, %58 : vector<14x64xf32>
    %cst_38 = arith.constant 0.000000e+00 : f32
    %60 = vector.broadcast %cst_38 : f32 to vector<14x64xf32>
    %61 = arith.cmpf ogt, %59, %60 : vector<14x64xf32>
    %cst_39 = arith.constant 2.000000e-01 : f32
    %62 = vector.broadcast %cst_39 : f32 to vector<14x64xf32>
    %63 = arith.mulf %62, %59 : vector<14x64xf32>
    %64 = arith.select %61, %59, %63 : vector<14x64xi1>, vector<14x64xf32>
    %c3_40 = arith.constant 3 : index
    %c0_41 = arith.constant 0 : index
    %c0_42 = arith.constant 0 : index
    %65 = vector.load %arg4[%c3_40, %c0_41, %c0_42] : memref<15x64x32xf32, #tpu.memory_space<vmem>>, vector<1x64x32xf32>
    %66 = vector.shape_cast %65 : vector<1x64x32xf32> to vector<64x32xf32>
    %cst_43 = arith.constant dense<0.000000e+00> : vector<14x32xf32>
    %67 = tpu.matmul %64, %66, %cst_43 {dimension_numbers = #tpu.dot_dimension_numbers<[1], [0], [0], [1], [0, 0, 1, 1], [], []>} : vector<14x64xf32>, vector<64x32xf32>, vector<14x32xf32> -> vector<14x32xf32>
    %68 = arith.addf %52, %67 : vector<14x32xf32>
    %c0_44 = arith.constant 0 : index
    %c4 = arith.constant 4 : index
    %c0_45 = arith.constant 0 : index
    %c0_46 = arith.constant 0 : index
    %69 = vector.load %arg1[%c0_44, %c4, %c0_45, %c0_46] : memref<1x15x14x240xf32, #tpu.memory_space<vmem>>, vector<1x1x14x240xf32>
    %70 = vector.shape_cast %69 : vector<1x1x14x240xf32> to vector<14x240xf32>
    %cst_47 = arith.constant dense<0.000000e+00> : vector<14x64xf32>
    %71 = tpu.matmul %70, %0, %cst_47 {dimension_numbers = #tpu.dot_dimension_numbers<[1], [0], [0], [1], [0, 0, 1, 1], [], []>} : vector<14x240xf32>, vector<240x64xf32>, vector<14x64xf32> -> vector<14x64xf32>
    %72 = vector.broadcast %2 : vector<1x64xf32> to vector<14x64xf32>
    %73 = arith.mulf %71, %72 : vector<14x64xf32>
    %74 = vector.broadcast %3 : vector<1x64xf32> to vector<14x64xf32>
    %75 = arith.addf %73, %74 : vector<14x64xf32>
    %cst_48 = arith.constant 0.000000e+00 : f32
    %76 = vector.broadcast %cst_48 : f32 to vector<14x64xf32>
    %77 = arith.cmpf ogt, %75, %76 : vector<14x64xf32>
    %cst_49 = arith.constant 2.000000e-01 : f32
    %78 = vector.broadcast %cst_49 : f32 to vector<14x64xf32>
    %79 = arith.mulf %78, %75 : vector<14x64xf32>
    %80 = arith.select %77, %75, %79 : vector<14x64xi1>, vector<14x64xf32>
    %c4_50 = arith.constant 4 : index
    %c0_51 = arith.constant 0 : index
    %c0_52 = arith.constant 0 : index
    %81 = vector.load %arg4[%c4_50, %c0_51, %c0_52] : memref<15x64x32xf32, #tpu.memory_space<vmem>>, vector<1x64x32xf32>
    %82 = vector.shape_cast %81 : vector<1x64x32xf32> to vector<64x32xf32>
    %cst_53 = arith.constant dense<0.000000e+00> : vector<14x32xf32>
    %83 = tpu.matmul %80, %82, %cst_53 {dimension_numbers = #tpu.dot_dimension_numbers<[1], [0], [0], [1], [0, 0, 1, 1], [], []>} : vector<14x64xf32>, vector<64x32xf32>, vector<14x32xf32> -> vector<14x32xf32>
    %84 = arith.addf %68, %83 : vector<14x32xf32>
    %c0_54 = arith.constant 0 : index
    %c5 = arith.constant 5 : index
    %c0_55 = arith.constant 0 : index
    %c0_56 = arith.constant 0 : index
    %85 = vector.load %arg1[%c0_54, %c5, %c0_55, %c0_56] : memref<1x15x14x240xf32, #tpu.memory_space<vmem>>, vector<1x1x14x240xf32>
    %86 = vector.shape_cast %85 : vector<1x1x14x240xf32> to vector<14x240xf32>
    %cst_57 = arith.constant dense<0.000000e+00> : vector<14x64xf32>
    %87 = tpu.matmul %86, %0, %cst_57 {dimension_numbers = #tpu.dot_dimension_numbers<[1], [0], [0], [1], [0, 0, 1, 1], [], []>} : vector<14x240xf32>, vector<240x64xf32>, vector<14x64xf32> -> vector<14x64xf32>
    %88 = vector.broadcast %2 : vector<1x64xf32> to vector<14x64xf32>
    %89 = arith.mulf %87, %88 : vector<14x64xf32>
    %90 = vector.broadcast %3 : vector<1x64xf32> to vector<14x64xf32>
    %91 = arith.addf %89, %90 : vector<14x64xf32>
    %cst_58 = arith.constant 0.000000e+00 : f32
    %92 = vector.broadcast %cst_58 : f32 to vector<14x64xf32>
    %93 = arith.cmpf ogt, %91, %92 : vector<14x64xf32>
    %cst_59 = arith.constant 2.000000e-01 : f32
    %94 = vector.broadcast %cst_59 : f32 to vector<14x64xf32>
    %95 = arith.mulf %94, %91 : vector<14x64xf32>
    %96 = arith.select %93, %91, %95 : vector<14x64xi1>, vector<14x64xf32>
    %c5_60 = arith.constant 5 : index
    %c0_61 = arith.constant 0 : index
    %c0_62 = arith.constant 0 : index
    %97 = vector.load %arg4[%c5_60, %c0_61, %c0_62] : memref<15x64x32xf32, #tpu.memory_space<vmem>>, vector<1x64x32xf32>
    %98 = vector.shape_cast %97 : vector<1x64x32xf32> to vector<64x32xf32>
    %cst_63 = arith.constant dense<0.000000e+00> : vector<14x32xf32>
    %99 = tpu.matmul %96, %98, %cst_63 {dimension_numbers = #tpu.dot_dimension_numbers<[1], [0], [0], [1], [0, 0, 1, 1], [], []>} : vector<14x64xf32>, vector<64x32xf32>, vector<14x32xf32> -> vector<14x32xf32>
    %100 = arith.addf %84, %99 : vector<14x32xf32>
    %c0_64 = arith.constant 0 : index
    %c6 = arith.constant 6 : index
    %c0_65 = arith.constant 0 : index
    %c0_66 = arith.constant 0 : index
    %101 = vector.load %arg1[%c0_64, %c6, %c0_65, %c0_66] : memref<1x15x14x240xf32, #tpu.memory_space<vmem>>, vector<1x1x14x240xf32>
    %102 = vector.shape_cast %101 : vector<1x1x14x240xf32> to vector<14x240xf32>
    %cst_67 = arith.constant dense<0.000000e+00> : vector<14x64xf32>
    %103 = tpu.matmul %102, %0, %cst_67 {dimension_numbers = #tpu.dot_dimension_numbers<[1], [0], [0], [1], [0, 0, 1, 1], [], []>} : vector<14x240xf32>, vector<240x64xf32>, vector<14x64xf32> -> vector<14x64xf32>
    %104 = vector.broadcast %2 : vector<1x64xf32> to vector<14x64xf32>
    %105 = arith.mulf %103, %104 : vector<14x64xf32>
    %106 = vector.broadcast %3 : vector<1x64xf32> to vector<14x64xf32>
    %107 = arith.addf %105, %106 : vector<14x64xf32>
    %cst_68 = arith.constant 0.000000e+00 : f32
    %108 = vector.broadcast %cst_68 : f32 to vector<14x64xf32>
    %109 = arith.cmpf ogt, %107, %108 : vector<14x64xf32>
    %cst_69 = arith.constant 2.000000e-01 : f32
    %110 = vector.broadcast %cst_69 : f32 to vector<14x64xf32>
    %111 = arith.mulf %110, %107 : vector<14x64xf32>
    %112 = arith.select %109, %107, %111 : vector<14x64xi1>, vector<14x64xf32>
    %c6_70 = arith.constant 6 : index
    %c0_71 = arith.constant 0 : index
    %c0_72 = arith.constant 0 : index
    %113 = vector.load %arg4[%c6_70, %c0_71, %c0_72] : memref<15x64x32xf32, #tpu.memory_space<vmem>>, vector<1x64x32xf32>
    %114 = vector.shape_cast %113 : vector<1x64x32xf32> to vector<64x32xf32>
    %cst_73 = arith.constant dense<0.000000e+00> : vector<14x32xf32>
    %115 = tpu.matmul %112, %114, %cst_73 {dimension_numbers = #tpu.dot_dimension_numbers<[1], [0], [0], [1], [0, 0, 1, 1], [], []>} : vector<14x64xf32>, vector<64x32xf32>, vector<14x32xf32> -> vector<14x32xf32>
    %116 = arith.addf %100, %115 : vector<14x32xf32>
    %c0_74 = arith.constant 0 : index
    %c7 = arith.constant 7 : index
    %c0_75 = arith.constant 0 : index
    %c0_76 = arith.constant 0 : index
    %117 = vector.load %arg1[%c0_74, %c7, %c0_75, %c0_76] : memref<1x15x14x240xf32, #tpu.memory_space<vmem>>, vector<1x1x14x240xf32>
    %118 = vector.shape_cast %117 : vector<1x1x14x240xf32> to vector<14x240xf32>
    %cst_77 = arith.constant dense<0.000000e+00> : vector<14x64xf32>
    %119 = tpu.matmul %118, %0, %cst_77 {dimension_numbers = #tpu.dot_dimension_numbers<[1], [0], [0], [1], [0, 0, 1, 1], [], []>} : vector<14x240xf32>, vector<240x64xf32>, vector<14x64xf32> -> vector<14x64xf32>
    %120 = vector.broadcast %2 : vector<1x64xf32> to vector<14x64xf32>
    %121 = arith.mulf %119, %120 : vector<14x64xf32>
    %122 = vector.broadcast %3 : vector<1x64xf32> to vector<14x64xf32>
    %123 = arith.addf %121, %122 : vector<14x64xf32>
    %cst_78 = arith.constant 0.000000e+00 : f32
    %124 = vector.broadcast %cst_78 : f32 to vector<14x64xf32>
    %125 = arith.cmpf ogt, %123, %124 : vector<14x64xf32>
    %cst_79 = arith.constant 2.000000e-01 : f32
    %126 = vector.broadcast %cst_79 : f32 to vector<14x64xf32>
    %127 = arith.mulf %126, %123 : vector<14x64xf32>
    %128 = arith.select %125, %123, %127 : vector<14x64xi1>, vector<14x64xf32>
    %c7_80 = arith.constant 7 : index
    %c0_81 = arith.constant 0 : index
    %c0_82 = arith.constant 0 : index
    %129 = vector.load %arg4[%c7_80, %c0_81, %c0_82] : memref<15x64x32xf32, #tpu.memory_space<vmem>>, vector<1x64x32xf32>
    %130 = vector.shape_cast %129 : vector<1x64x32xf32> to vector<64x32xf32>
    %cst_83 = arith.constant dense<0.000000e+00> : vector<14x32xf32>
    %131 = tpu.matmul %128, %130, %cst_83 {dimension_numbers = #tpu.dot_dimension_numbers<[1], [0], [0], [1], [0, 0, 1, 1], [], []>} : vector<14x64xf32>, vector<64x32xf32>, vector<14x32xf32> -> vector<14x32xf32>
    %132 = arith.addf %116, %131 : vector<14x32xf32>
    %c0_84 = arith.constant 0 : index
    %c8 = arith.constant 8 : index
    %c0_85 = arith.constant 0 : index
    %c0_86 = arith.constant 0 : index
    %133 = vector.load %arg1[%c0_84, %c8, %c0_85, %c0_86] : memref<1x15x14x240xf32, #tpu.memory_space<vmem>>, vector<1x1x14x240xf32>
    %134 = vector.shape_cast %133 : vector<1x1x14x240xf32> to vector<14x240xf32>
    %cst_87 = arith.constant dense<0.000000e+00> : vector<14x64xf32>
    %135 = tpu.matmul %134, %0, %cst_87 {dimension_numbers = #tpu.dot_dimension_numbers<[1], [0], [0], [1], [0, 0, 1, 1], [], []>} : vector<14x240xf32>, vector<240x64xf32>, vector<14x64xf32> -> vector<14x64xf32>
    %136 = vector.broadcast %2 : vector<1x64xf32> to vector<14x64xf32>
    %137 = arith.mulf %135, %136 : vector<14x64xf32>
    %138 = vector.broadcast %3 : vector<1x64xf32> to vector<14x64xf32>
    %139 = arith.addf %137, %138 : vector<14x64xf32>
    %cst_88 = arith.constant 0.000000e+00 : f32
    %140 = vector.broadcast %cst_88 : f32 to vector<14x64xf32>
    %141 = arith.cmpf ogt, %139, %140 : vector<14x64xf32>
    %cst_89 = arith.constant 2.000000e-01 : f32
    %142 = vector.broadcast %cst_89 : f32 to vector<14x64xf32>
    %143 = arith.mulf %142, %139 : vector<14x64xf32>
    %144 = arith.select %141, %139, %143 : vector<14x64xi1>, vector<14x64xf32>
    %c8_90 = arith.constant 8 : index
    %c0_91 = arith.constant 0 : index
    %c0_92 = arith.constant 0 : index
    %145 = vector.load %arg4[%c8_90, %c0_91, %c0_92] : memref<15x64x32xf32, #tpu.memory_space<vmem>>, vector<1x64x32xf32>
    %146 = vector.shape_cast %145 : vector<1x64x32xf32> to vector<64x32xf32>
    %cst_93 = arith.constant dense<0.000000e+00> : vector<14x32xf32>
    %147 = tpu.matmul %144, %146, %cst_93 {dimension_numbers = #tpu.dot_dimension_numbers<[1], [0], [0], [1], [0, 0, 1, 1], [], []>} : vector<14x64xf32>, vector<64x32xf32>, vector<14x32xf32> -> vector<14x32xf32>
    %148 = arith.addf %132, %147 : vector<14x32xf32>
    %c0_94 = arith.constant 0 : index
    %c9 = arith.constant 9 : index
    %c0_95 = arith.constant 0 : index
    %c0_96 = arith.constant 0 : index
    %149 = vector.load %arg1[%c0_94, %c9, %c0_95, %c0_96] : memref<1x15x14x240xf32, #tpu.memory_space<vmem>>, vector<1x1x14x240xf32>
    %150 = vector.shape_cast %149 : vector<1x1x14x240xf32> to vector<14x240xf32>
    %cst_97 = arith.constant dense<0.000000e+00> : vector<14x64xf32>
    %151 = tpu.matmul %150, %0, %cst_97 {dimension_numbers = #tpu.dot_dimension_numbers<[1], [0], [0], [1], [0, 0, 1, 1], [], []>} : vector<14x240xf32>, vector<240x64xf32>, vector<14x64xf32> -> vector<14x64xf32>
    %152 = vector.broadcast %2 : vector<1x64xf32> to vector<14x64xf32>
    %153 = arith.mulf %151, %152 : vector<14x64xf32>
    %154 = vector.broadcast %3 : vector<1x64xf32> to vector<14x64xf32>
    %155 = arith.addf %153, %154 : vector<14x64xf32>
    %cst_98 = arith.constant 0.000000e+00 : f32
    %156 = vector.broadcast %cst_98 : f32 to vector<14x64xf32>
    %157 = arith.cmpf ogt, %155, %156 : vector<14x64xf32>
    %cst_99 = arith.constant 2.000000e-01 : f32
    %158 = vector.broadcast %cst_99 : f32 to vector<14x64xf32>
    %159 = arith.mulf %158, %155 : vector<14x64xf32>
    %160 = arith.select %157, %155, %159 : vector<14x64xi1>, vector<14x64xf32>
    %c9_100 = arith.constant 9 : index
    %c0_101 = arith.constant 0 : index
    %c0_102 = arith.constant 0 : index
    %161 = vector.load %arg4[%c9_100, %c0_101, %c0_102] : memref<15x64x32xf32, #tpu.memory_space<vmem>>, vector<1x64x32xf32>
    %162 = vector.shape_cast %161 : vector<1x64x32xf32> to vector<64x32xf32>
    %cst_103 = arith.constant dense<0.000000e+00> : vector<14x32xf32>
    %163 = tpu.matmul %160, %162, %cst_103 {dimension_numbers = #tpu.dot_dimension_numbers<[1], [0], [0], [1], [0, 0, 1, 1], [], []>} : vector<14x64xf32>, vector<64x32xf32>, vector<14x32xf32> -> vector<14x32xf32>
    %164 = arith.addf %148, %163 : vector<14x32xf32>
    %c0_104 = arith.constant 0 : index
    %c10 = arith.constant 10 : index
    %c0_105 = arith.constant 0 : index
    %c0_106 = arith.constant 0 : index
    %165 = vector.load %arg1[%c0_104, %c10, %c0_105, %c0_106] : memref<1x15x14x240xf32, #tpu.memory_space<vmem>>, vector<1x1x14x240xf32>
    %166 = vector.shape_cast %165 : vector<1x1x14x240xf32> to vector<14x240xf32>
    %cst_107 = arith.constant dense<0.000000e+00> : vector<14x64xf32>
    %167 = tpu.matmul %166, %0, %cst_107 {dimension_numbers = #tpu.dot_dimension_numbers<[1], [0], [0], [1], [0, 0, 1, 1], [], []>} : vector<14x240xf32>, vector<240x64xf32>, vector<14x64xf32> -> vector<14x64xf32>
    %168 = vector.broadcast %2 : vector<1x64xf32> to vector<14x64xf32>
    %169 = arith.mulf %167, %168 : vector<14x64xf32>
    %170 = vector.broadcast %3 : vector<1x64xf32> to vector<14x64xf32>
    %171 = arith.addf %169, %170 : vector<14x64xf32>
    %cst_108 = arith.constant 0.000000e+00 : f32
    %172 = vector.broadcast %cst_108 : f32 to vector<14x64xf32>
    %173 = arith.cmpf ogt, %171, %172 : vector<14x64xf32>
    %cst_109 = arith.constant 2.000000e-01 : f32
    %174 = vector.broadcast %cst_109 : f32 to vector<14x64xf32>
    %175 = arith.mulf %174, %171 : vector<14x64xf32>
    %176 = arith.select %173, %171, %175 : vector<14x64xi1>, vector<14x64xf32>
    %c10_110 = arith.constant 10 : index
    %c0_111 = arith.constant 0 : index
    %c0_112 = arith.constant 0 : index
    %177 = vector.load %arg4[%c10_110, %c0_111, %c0_112] : memref<15x64x32xf32, #tpu.memory_space<vmem>>, vector<1x64x32xf32>
    %178 = vector.shape_cast %177 : vector<1x64x32xf32> to vector<64x32xf32>
    %cst_113 = arith.constant dense<0.000000e+00> : vector<14x32xf32>
    %179 = tpu.matmul %176, %178, %cst_113 {dimension_numbers = #tpu.dot_dimension_numbers<[1], [0], [0], [1], [0, 0, 1, 1], [], []>} : vector<14x64xf32>, vector<64x32xf32>, vector<14x32xf32> -> vector<14x32xf32>
    %180 = arith.addf %164, %179 : vector<14x32xf32>
    %c0_114 = arith.constant 0 : index
    %c11 = arith.constant 11 : index
    %c0_115 = arith.constant 0 : index
    %c0_116 = arith.constant 0 : index
    %181 = vector.load %arg1[%c0_114, %c11, %c0_115, %c0_116] : memref<1x15x14x240xf32, #tpu.memory_space<vmem>>, vector<1x1x14x240xf32>
    %182 = vector.shape_cast %181 : vector<1x1x14x240xf32> to vector<14x240xf32>
    %cst_117 = arith.constant dense<0.000000e+00> : vector<14x64xf32>
    %183 = tpu.matmul %182, %0, %cst_117 {dimension_numbers = #tpu.dot_dimension_numbers<[1], [0], [0], [1], [0, 0, 1, 1], [], []>} : vector<14x240xf32>, vector<240x64xf32>, vector<14x64xf32> -> vector<14x64xf32>
    %184 = vector.broadcast %2 : vector<1x64xf32> to vector<14x64xf32>
    %185 = arith.mulf %183, %184 : vector<14x64xf32>
    %186 = vector.broadcast %3 : vector<1x64xf32> to vector<14x64xf32>
    %187 = arith.addf %185, %186 : vector<14x64xf32>
    %cst_118 = arith.constant 0.000000e+00 : f32
    %188 = vector.broadcast %cst_118 : f32 to vector<14x64xf32>
    %189 = arith.cmpf ogt, %187, %188 : vector<14x64xf32>
    %cst_119 = arith.constant 2.000000e-01 : f32
    %190 = vector.broadcast %cst_119 : f32 to vector<14x64xf32>
    %191 = arith.mulf %190, %187 : vector<14x64xf32>
    %192 = arith.select %189, %187, %191 : vector<14x64xi1>, vector<14x64xf32>
    %c11_120 = arith.constant 11 : index
    %c0_121 = arith.constant 0 : index
    %c0_122 = arith.constant 0 : index
    %193 = vector.load %arg4[%c11_120, %c0_121, %c0_122] : memref<15x64x32xf32, #tpu.memory_space<vmem>>, vector<1x64x32xf32>
    %194 = vector.shape_cast %193 : vector<1x64x32xf32> to vector<64x32xf32>
    %cst_123 = arith.constant dense<0.000000e+00> : vector<14x32xf32>
    %195 = tpu.matmul %192, %194, %cst_123 {dimension_numbers = #tpu.dot_dimension_numbers<[1], [0], [0], [1], [0, 0, 1, 1], [], []>} : vector<14x64xf32>, vector<64x32xf32>, vector<14x32xf32> -> vector<14x32xf32>
    %196 = arith.addf %180, %195 : vector<14x32xf32>
    %c0_124 = arith.constant 0 : index
    %c12 = arith.constant 12 : index
    %c0_125 = arith.constant 0 : index
    %c0_126 = arith.constant 0 : index
    %197 = vector.load %arg1[%c0_124, %c12, %c0_125, %c0_126] : memref<1x15x14x240xf32, #tpu.memory_space<vmem>>, vector<1x1x14x240xf32>
    %198 = vector.shape_cast %197 : vector<1x1x14x240xf32> to vector<14x240xf32>
    %cst_127 = arith.constant dense<0.000000e+00> : vector<14x64xf32>
    %199 = tpu.matmul %198, %0, %cst_127 {dimension_numbers = #tpu.dot_dimension_numbers<[1], [0], [0], [1], [0, 0, 1, 1], [], []>} : vector<14x240xf32>, vector<240x64xf32>, vector<14x64xf32> -> vector<14x64xf32>
    %200 = vector.broadcast %2 : vector<1x64xf32> to vector<14x64xf32>
    %201 = arith.mulf %199, %200 : vector<14x64xf32>
    %202 = vector.broadcast %3 : vector<1x64xf32> to vector<14x64xf32>
    %203 = arith.addf %201, %202 : vector<14x64xf32>
    %cst_128 = arith.constant 0.000000e+00 : f32
    %204 = vector.broadcast %cst_128 : f32 to vector<14x64xf32>
    %205 = arith.cmpf ogt, %203, %204 : vector<14x64xf32>
    %cst_129 = arith.constant 2.000000e-01 : f32
    %206 = vector.broadcast %cst_129 : f32 to vector<14x64xf32>
    %207 = arith.mulf %206, %203 : vector<14x64xf32>
    %208 = arith.select %205, %203, %207 : vector<14x64xi1>, vector<14x64xf32>
    %c12_130 = arith.constant 12 : index
    %c0_131 = arith.constant 0 : index
    %c0_132 = arith.constant 0 : index
    %209 = vector.load %arg4[%c12_130, %c0_131, %c0_132] : memref<15x64x32xf32, #tpu.memory_space<vmem>>, vector<1x64x32xf32>
    %210 = vector.shape_cast %209 : vector<1x64x32xf32> to vector<64x32xf32>
    %cst_133 = arith.constant dense<0.000000e+00> : vector<14x32xf32>
    %211 = tpu.matmul %208, %210, %cst_133 {dimension_numbers = #tpu.dot_dimension_numbers<[1], [0], [0], [1], [0, 0, 1, 1], [], []>} : vector<14x64xf32>, vector<64x32xf32>, vector<14x32xf32> -> vector<14x32xf32>
    %212 = arith.addf %196, %211 : vector<14x32xf32>
    %c0_134 = arith.constant 0 : index
    %c13 = arith.constant 13 : index
    %c0_135 = arith.constant 0 : index
    %c0_136 = arith.constant 0 : index
    %213 = vector.load %arg1[%c0_134, %c13, %c0_135, %c0_136] : memref<1x15x14x240xf32, #tpu.memory_space<vmem>>, vector<1x1x14x240xf32>
    %214 = vector.shape_cast %213 : vector<1x1x14x240xf32> to vector<14x240xf32>
    %cst_137 = arith.constant dense<0.000000e+00> : vector<14x64xf32>
    %215 = tpu.matmul %214, %0, %cst_137 {dimension_numbers = #tpu.dot_dimension_numbers<[1], [0], [0], [1], [0, 0, 1, 1], [], []>} : vector<14x240xf32>, vector<240x64xf32>, vector<14x64xf32> -> vector<14x64xf32>
    %216 = vector.broadcast %2 : vector<1x64xf32> to vector<14x64xf32>
    %217 = arith.mulf %215, %216 : vector<14x64xf32>
    %218 = vector.broadcast %3 : vector<1x64xf32> to vector<14x64xf32>
    %219 = arith.addf %217, %218 : vector<14x64xf32>
    %cst_138 = arith.constant 0.000000e+00 : f32
    %220 = vector.broadcast %cst_138 : f32 to vector<14x64xf32>
    %221 = arith.cmpf ogt, %219, %220 : vector<14x64xf32>
    %cst_139 = arith.constant 2.000000e-01 : f32
    %222 = vector.broadcast %cst_139 : f32 to vector<14x64xf32>
    %223 = arith.mulf %222, %219 : vector<14x64xf32>
    %224 = arith.select %221, %219, %223 : vector<14x64xi1>, vector<14x64xf32>
    %c13_140 = arith.constant 13 : index
    %c0_141 = arith.constant 0 : index
    %c0_142 = arith.constant 0 : index
    %225 = vector.load %arg4[%c13_140, %c0_141, %c0_142] : memref<15x64x32xf32, #tpu.memory_space<vmem>>, vector<1x64x32xf32>
    %226 = vector.shape_cast %225 : vector<1x64x32xf32> to vector<64x32xf32>
    %cst_143 = arith.constant dense<0.000000e+00> : vector<14x32xf32>
    %227 = tpu.matmul %224, %226, %cst_143 {dimension_numbers = #tpu.dot_dimension_numbers<[1], [0], [0], [1], [0, 0, 1, 1], [], []>} : vector<14x64xf32>, vector<64x32xf32>, vector<14x32xf32> -> vector<14x32xf32>
    %228 = arith.addf %212, %227 : vector<14x32xf32>
    %c0_144 = arith.constant 0 : index
    %c14 = arith.constant 14 : index
    %c0_145 = arith.constant 0 : index
    %c0_146 = arith.constant 0 : index
    %229 = vector.load %arg1[%c0_144, %c14, %c0_145, %c0_146] : memref<1x15x14x240xf32, #tpu.memory_space<vmem>>, vector<1x1x14x240xf32>
    %230 = vector.shape_cast %229 : vector<1x1x14x240xf32> to vector<14x240xf32>
    %cst_147 = arith.constant dense<0.000000e+00> : vector<14x64xf32>
    %231 = tpu.matmul %230, %0, %cst_147 {dimension_numbers = #tpu.dot_dimension_numbers<[1], [0], [0], [1], [0, 0, 1, 1], [], []>} : vector<14x240xf32>, vector<240x64xf32>, vector<14x64xf32> -> vector<14x64xf32>
    %232 = vector.broadcast %2 : vector<1x64xf32> to vector<14x64xf32>
    %233 = arith.mulf %231, %232 : vector<14x64xf32>
    %234 = vector.broadcast %3 : vector<1x64xf32> to vector<14x64xf32>
    %235 = arith.addf %233, %234 : vector<14x64xf32>
    %cst_148 = arith.constant 0.000000e+00 : f32
    %236 = vector.broadcast %cst_148 : f32 to vector<14x64xf32>
    %237 = arith.cmpf ogt, %235, %236 : vector<14x64xf32>
    %cst_149 = arith.constant 2.000000e-01 : f32
    %238 = vector.broadcast %cst_149 : f32 to vector<14x64xf32>
    %239 = arith.mulf %238, %235 : vector<14x64xf32>
    %240 = arith.select %237, %235, %239 : vector<14x64xi1>, vector<14x64xf32>
    %c14_150 = arith.constant 14 : index
    %c0_151 = arith.constant 0 : index
    %c0_152 = arith.constant 0 : index
    %241 = vector.load %arg4[%c14_150, %c0_151, %c0_152] : memref<15x64x32xf32, #tpu.memory_space<vmem>>, vector<1x64x32xf32>
    %242 = vector.shape_cast %241 : vector<1x64x32xf32> to vector<64x32xf32>
    %cst_153 = arith.constant dense<0.000000e+00> : vector<14x32xf32>
    %243 = tpu.matmul %240, %242, %cst_153 {dimension_numbers = #tpu.dot_dimension_numbers<[1], [0], [0], [1], [0, 0, 1, 1], [], []>} : vector<14x64xf32>, vector<64x32xf32>, vector<14x32xf32> -> vector<14x32xf32>
    %244 = arith.addf %228, %243 : vector<14x32xf32>
    %c0_154 = arith.constant 0 : index
    %c0_155 = arith.constant 0 : index
    %245 = vector.load %arg5[%c0_154, %c0_155] : memref<1x32xf32, #tpu.memory_space<vmem>>, vector<1x32xf32>
    %246 = vector.broadcast %245 : vector<1x32xf32> to vector<14x32xf32>
    %247 = arith.addf %244, %246 : vector<14x32xf32>
    %c0_156 = arith.constant 0 : index
    %c0_157 = arith.constant 0 : index
    %c0_158 = arith.constant 0 : index
    %248 = vector.load %arg6[%c0_156, %c0_157, %c0_158] : memref<1x14x32xf32, #tpu.memory_space<vmem>>, vector<1x14x32xf32>
    %249 = vector.shape_cast %248 : vector<1x14x32xf32> to vector<14x32xf32>
    %250 = vector.shape_cast %247 : vector<14x32xf32> to vector<1x14x32xf32>
    tpu.vector_store %arg6[%c0_156, %c0_157, %c0_158], %250 {strides = array<i32>} : memref<1x14x32xf32, #tpu.memory_space<vmem>>, vector<1x14x32xf32>,
    return
  }
  func.func @transform_0(%arg0: i32) -> (i32, i32, i32, i32) {
    %c0_i32 = arith.constant 0 : i32
    %c0_i32_0 = arith.constant 0 : i32
    %c0_i32_1 = arith.constant 0 : i32
    %c0_i32_2 = arith.constant 0 : i32
    return %arg0, %c0_i32, %c0_i32_0, %c0_i32_1 : i32, i32, i32, i32
  }
  func.func @transform_1(%arg0: i32) -> (i32, i32) {
    %c0_i32 = arith.constant 0 : i32
    %c0_i32_0 = arith.constant 0 : i32
    %c0_i32_1 = arith.constant 0 : i32
    return %c0_i32, %c0_i32_0 : i32, i32
  }
  func.func @transform_2(%arg0: i32) -> (i32, i32) {
    %c0_i32 = arith.constant 0 : i32
    %c0_i32_0 = arith.constant 0 : i32
    %c0_i32_1 = arith.constant 0 : i32
    return %c0_i32, %c0_i32_0 : i32, i32
  }
  func.func @transform_3(%arg0: i32) -> (i32, i32, i32) {
    %c0_i32 = arith.constant 0 : i32
    %c0_i32_0 = arith.constant 0 : i32
    %c0_i32_1 = arith.constant 0 : i32
    %c0_i32_2 = arith.constant 0 : i32
    return %c0_i32, %c0_i32_0, %c0_i32_1 : i32, i32, i32
  }
  func.func @transform_4(%arg0: i32) -> (i32, i32) {
    %c0_i32 = arith.constant 0 : i32
    %c0_i32_0 = arith.constant 0 : i32
    %c0_i32_1 = arith.constant 0 : i32
    return %c0_i32, %c0_i32_0 : i32, i32
  }
  func.func @transform_5(%arg0: i32) -> (i32, i32, i32) {
    %c0_i32 = arith.constant 0 : i32
    %c0_i32_0 = arith.constant 0 : i32
    %c0_i32_1 = arith.constant 0 : i32
    return %arg0, %c0_i32, %c0_i32_0 : i32, i32, i32
  }
}

</mosaic_0001>

<bundles_post_ra>
// kernel: tpu_custom_call.1
= control target key start
LH: loop header
LB: loop body
LE: loop exit
PB: predicated region body
PF: predicated region fallthrough
CT: control target
= control target key end

     0   :  { %s4815_s18 = smov 0   ;;  %s5991_s0 = inlined_call_operand.vmem [shape: f32[2,15,14,240], index: 0, kind: input, shape index: {}]   ;;  %s5992_s1 = inlined_call_operand.vmem [shape: f32[240,64], index: 1, kind: input, shape index: {}]   ;;  %s5993_s2 = inlined_call_operand.vmem [shape: f32[2,64], index: 2, kind: input, shape index: {}]   ;;  %s5994_s3 = inlined_call_operand.vmem [shape: f32[15,64,32], index: 3, kind: input, shape index: {}]   ;;  %s5995_s4 = inlined_call_operand.vmem [shape: f32[1,32], index: 4, kind: input, shape index: {}]   ;;  %s5996_s5 = inlined_call_operand.vmem [shape: f32[2,14,32], index: 5, kind: output, shape index: {}]  }
   0x1 LB: > { %s3148_s19 = sadd.s32 4294967295, %s4782_s18   ;;  %p3152_p0 = scmp.ge.s32.totalorder %s4782_s18, 1  ;;  %s4782_s18 = sphi %s4815_s18, %s15_s18  }
   0x2   : > { %p187_p1 = scmp.lt.s32.totalorder %s4782_s18, 3 }
   0x4   : > { %p188_p2 = pnand %p3152_p0, %p187_p1 }
   0x5   : > { %v225_v0 = vld [vmem:[%s5992_s1] sm:$0xff] (!%p188_p2)  ;;  %v226_v1 = vld [vmem:[%s5992_s1 + $0x8] sm:$0xff] (!%p188_p2)  ;;  %v227_v2 = vld [vmem:[%s5992_s1 + $0x10] sm:$0xff] (!%p188_p2)  ;;  %p215_p3 = scmp.lt.s32.totalorder (!%p188_p2), %s3148_s19, 1  ;;  %v4784_v3 = vmov (!%p188_p2), 0.0|0.0   ;;  %vm260_vm0 = vcmask (!%p188_p2), 916480  }
   0x6   : > { %191 = sbr.rel (%p188_p2) target bundleno = 2302 (0x8fe), region = 40  ;;  %3868 = vmatprep.subr.bf16.mxu1 (!%p188_p2), %v4784_v3  ;;  %v4833_v4 = vpack.c.bf16 (!%p188_p2), %v226_v1, %v225_v0  ;;  %v228_v5 = vld [vmem:[%s5992_s1 + $0x18] sm:$0xff] (!%p188_p2)  ;;  %3823 = vmatprep.subr.bf16.mxu0 (!%p188_p2), %v4784_v3  ;;  %v229_v7 = vld [vmem:[%s5992_s1 + $0x20] sm:$0xff] (!%p188_p2)  ;;  %v230_v8 = vld [vmem:[%s5992_s1 + $0x28] sm:$0xff] (!%p188_p2)  ;;  %vm473_vm2 = vcmask (!%p188_p2), 523264  }
   0x7   : > { %v4842_v6 = vpack.c.bf16 (!%p188_p2), %v228_v5, %v227_v2  ;;  %v4855_v9 = vpack.c.bf16 (!%p188_p2), %v230_v8, %v229_v7  ;;  %v231_v10 = vld [vmem:[%s5992_s1 + $0x30] sm:$0xff] (!%p188_p2)  ;;  %v232_v11 = vld [vmem:[%s5992_s1 + $0x38] sm:$0xff] (!%p188_p2)  ;;  %v233_v14 = vld [vmem:[%s5992_s1 + $0x40] sm:$0xff] (!%p188_p2)  ;;  %v342_v2 = vlaneseq (!%p188_p2) }
   0x8   : > { %3870 = vmatpush1.bf16.msra.mxu1 (!%p188_p2), %v4833_v4  ;;  %3825 = vmatpush1.bf16.msra.mxu0 (!%p188_p2), %v4833_v4  ;;  %v4873_v13 = vpack.c.bf16 (!%p188_p2), %v232_v11, %v231_v10  ;;  %v234_v15 = vld [vmem:[%s5992_s1 + $0x48] sm:$0xff] (!%p188_p2)  ;;  %v235_v17 = vld [vmem:[%s5992_s1 + $0x50] sm:$0xff] (!%p188_p2)  ;;  %v236_v18 = vld [vmem:[%s5992_s1 + $0x58] sm:$0xff] (!%p188_p2) }
   0x9   : > { %3871 = vmatprep.subr.bf16.mxu1 (!%p188_p2), %v4784_v3  ;;  %3826 = vmatprep.subr.bf16.mxu0 (!%p188_p2), %v4784_v3  ;;  %v4886_v16 = vpack.c.bf16 (!%p188_p2), %v234_v15, %v233_v14  ;;  %v4898_v19 = vpack.c.bf16 (!%p188_p2), %v236_v18, %v235_v17  ;;  %v237_v20 = vld [vmem:[%s5992_s1 + $0x60] sm:$0xff] (!%p188_p2)  ;;  %v238_v21 = vld [vmem:[%s5992_s1 + $0x68] sm:$0xff] (!%p188_p2)  ;;  %v239_v23 = vld [vmem:[%s5992_s1 + $0x70] sm:$0xff] (!%p188_p2)  ;;  %v343_v5 = vshrl.u32 (!%p188_p2), %v342_v2, 7 }
   0xa   : > { %v4910_v22 = vpack.c.bf16 (!%p188_p2), %v238_v21, %v237_v20  ;;  %v240_v24 = vld [vmem:[%s5992_s1 + $0x78] sm:$0xff] (!%p188_p2)  ;;  %v241_v26 = vld [vmem:[%s5992_s1 + $0x80] sm:$0xff] (!%p188_p2)  ;;  %v242_v27 = vld [vmem:[%s5992_s1 + $0x88] sm:$0xff] (!%p188_p2) }
   0xb   : > { %v4922_v25 = vpack.c.bf16 (!%p188_p2), %v240_v24, %v239_v23  ;;  %v4934_v28 = vpack.c.bf16 (!%p188_p2), %v242_v27, %v241_v26  ;;  %v243_v29 = vld [vmem:[%s5992_s1 + $0x90] sm:$0xff] (!%p188_p2)  ;;  %v244_v30 = vld [vmem:[%s5992_s1 + $0x98] sm:$0xff] (!%p188_p2)  ;;  %v245_v32 = vld [vmem:[%s5992_s1 + $0xa0] sm:$0xff] (!%p188_p2)  ;;  %v344_v7 = vsub.s32 (!%p188_p2), 0, %v343_v5  ;;  %v350_v10 = vsub.s32 (!%p188_p2), 1, %v343_v5 }
   0xc   : > { %3873 = vmatpush1.bf16.msra.mxu1 (!%p188_p2), %v4842_v6  ;;  %3828 = vmatpush1.bf16.msra.mxu0 (!%p188_p2), %v4842_v6  ;;  %v4946_v31 = vpack.c.bf16 (!%p188_p2), %v244_v30, %v243_v29  ;;  %v246_v33 = vld [vmem:[%s5992_s1 + $0xa8] sm:$0xff] (!%p188_p2)  ;;  %v247_v35 = vld [vmem:[%s5992_s1 + $0xb0] sm:$0xff] (!%p188_p2)  ;;  %v248_v36 = vld [vmem:[%s5992_s1 + $0xb8] sm:$0xff] (!%p188_p2) }
   0xd   : > { %s5998_s19 = smov (!%p215_p3, %s3148_s19), 1  ;;  %3874 = vmatprep.subr.bf16.mxu1 %v4784_v3  ;;  %3829 = vmatprep.subr.bf16.mxu0 %v4784_v3  ;;  %v4958_v34 = vpack.c.bf16 %v246_v33, %v245_v32  ;;  %v4970_v37 = vpack.c.bf16 %v248_v36, %v247_v35  ;;  %v249_v38 = vld [vmem:[%s5992_s1 + $0xc0] sm:$0xff]  ;;  %v250_v39 = vld [vmem:[%s5992_s1 + $0xc8] sm:$0xff]  ;;  %v251_v41 = vld [vmem:[%s5992_s1 + $0xd0] sm:$0xff] }
   0xe   : > { %s4766_s7 = smul.u32 480, %s5998_s19  ;;  %v4982_v40 = vpack.c.bf16 %v250_v39, %v249_v38  ;;  %v252_v42 = vld [vmem:[%s5992_s1 + $0xd8] sm:$0xff]  ;;  %v253_v44 = vld [vmem:[%s5992_s1 + $0xe0] sm:$0xff]  ;;  %v254_v45 = vld [vmem:[%s5992_s1 + $0xe8] sm:$0xff]  ;;  %s3387_s14 = sshll.u32 %s5998_s19, 4 }
   0xf   : > { %v4994_v43 = vpack.c.bf16 %v252_v42, %v251_v41  ;;  %v3164_v46 = vld [vmem:[%s5994_s3 + $0x40] sm:$0xff]  ;;  %v3165_v47 = vld [vmem:[%s5994_s3 + $0x48] sm:$0xff]  ;;  %v5012_v48 = vpack.c.bf16 %v254_v45, %v253_v44  ;;  %v3166_v50 = vld [vmem:[%s5994_s3 + $0x50] sm:$0xff]  ;;  %s224_s21 = scalar_lea.vmem %s5996_s5, %s3387_s14 }
  0x10   : > { %s4860_s10 = scalar_lea.vmem %s5991_s0, %s4766_s7  ;;  %3876 = vmatpush1.bf16.msra.mxu1 %v4855_v9  ;;  %3831 = vmatpush1.bf16.msra.mxu0 %v4855_v9  ;;  %v3913_v49 = vpack.c.bf16 %v3165_v47, %v3164_v46  ;;  %v3167_v51 = vld [vmem:[%s5994_s3 + $0x58] sm:$0xff]  ;;  %v3168_v56 = vld [vmem:[%s5994_s3 + $0x60] sm:$0xff]  ;;  %v3169_v57 = vld [vmem:[%s5994_s3 + $0x68] sm:$0xff] }
  0x11   : > { %v3159_v12 = vld [vmem:[%s4860_s10 + $0x28] sm:$0xff]  ;;  %3877 = vmatprep.subr.bf16.mxu1 %v4784_v3  ;;  %3832 = vmatprep.subr.bf16.mxu0 %v4784_v3  ;;  %v3158_v52 = vld [vmem:[%s4860_s10 + $0x20] sm:$0xff]  ;;  %v3161_v53 = vld [vmem:[%s4860_s10 + $0x38] sm:$0x3f]  ;;  %v3917_v54 = vpack.c.bf16 %v3167_v51, %v3166_v50  ;;  %v3921_v58 = vpack.c.bf16 %v3169_v57, %v3168_v56 }
  0x12   : > { %3162 = vmatprep.mubr.msk.f32.mxu1 %vm260_vm0, %v3159_v12  ;;  %v3160_v55 = vld [vmem:[%s4860_s10 + $0x30] sm:$0x3f]  ;;  %v3171_v60 = vld [vmem:[%s5994_s3 + $0x78] sm:$0xff]  ;;  %v257_v62 = vld [vmem:[%s4860_s10 + $0x8] sm:$0xff] }
  0x13   : > { %v3170_v59 = vld [vmem:[%s5994_s3 + $0x70] sm:$0xff]  ;;  %3156 = vmatprep.mubr.msk.f32.mxu0 %vm260_vm0, %v257_v62  ;;  %v256_v63 = vld [vmem:[%s4860_s10] sm:$0xff]  ;;  %v259_v0 = vld [vmem:[%s4860_s10 + $0x18] sm:$0x3f] }
  0x14   : > { %3879 = vmatpush1.bf16.msra.mxu1 %v4873_v13  ;;  %3834 = vmatpush1.bf16.msra.mxu0 %v4873_v13  ;;  %v3925_v61 = vpack.c.bf16 %v3171_v60, %v3170_v59  ;;  %v258_v1 = vld [vmem:[%s4860_s10 + $0x10] sm:$0x3f]  ;;  %v255_v8 = vld [vmem:[%s5993_s2] sm:$0x3]  ;;  %v3177_v30 = vld [vmem:[%s4860_s10 + $0x48] sm:$0xff] }
  0x15   : > { %3880 = vmatprep.subr.bf16.mxu1 %v4784_v3  ;;  %3835 = vmatprep.subr.bf16.mxu0 %v4784_v3  ;;  %v5051_v11 = vrot.slane %v255_v8, %v344_v7  ;;  %v5053_v12 = vrot.slane %v255_v8, %v350_v10  ;;  %v3176_v33 = vld [vmem:[%s4860_s10 + $0x40] sm:$0xff]  ;;  %v3179_v35 = vld [vmem:[%s4860_s10 + $0x58] sm:$0x3f]  ;;  %v3178_v36 = vld [vmem:[%s4860_s10 + $0x50] sm:$0x3f] }
  0x16   : > { %v360_v38 = vld [vmem:[%s5994_s3] sm:$0xff]  ;;  %v361_v39 = vld [vmem:[%s5994_s3 + $0x8] sm:$0xff]  ;;  %v362_v41 = vld [vmem:[%s5994_s3 + $0x10] sm:$0xff] }
  0x17   : > { %v3929_v42 = vpack.c.bf16 %v361_v39, %v360_v38  ;;  %v363_v44 = vld [vmem:[%s5994_s3 + $0x18] sm:$0xff]  ;;  %v364_v46 = vld [vmem:[%s5994_s3 + $0x20] sm:$0xff]  ;;  %v365_v47 = vld [vmem:[%s5994_s3 + $0x28] sm:$0xff] }
  0x18   : > { %3882 = vmatpush1.bf16.msra.mxu1 %v4886_v16  ;;  %3837 = vmatpush1.bf16.msra.mxu0 %v4886_v16  ;;  %v3933_v45 = vpack.c.bf16 %v363_v44, %v362_v41  ;;  %v366_v50 = vld [vmem:[%s5994_s3 + $0x30] sm:$0xff]  ;;  %v367_v51 = vld [vmem:[%s5994_s3 + $0x38] sm:$0xff] }
  0x19   : > { %3883 = vmatprep.subr.bf16.mxu1 %v4784_v3  ;;  %3838 = vmatprep.subr.bf16.mxu0 %v4784_v3  ;;  %v3184_v2 = vld [vmem:[%s5994_s3 + $0x90] sm:$0xff]  ;;  %v3185_v5 = vld [vmem:[%s5994_s3 + $0x98] sm:$0xff] }
  0x1a   : > { %v3994_v8 = vpack.c.bf16 %v3185_v5, %v3184_v2  ;;  %v3203_v2 = vld [vmem:[%s5994_s3 + $0xe8] sm:$0xff] }
  0x1c   : > { %3885 = vmatpush1.bf16.msra.mxu1 %v4898_v19  ;;  %3840 = vmatpush1.bf16.msra.mxu0 %v4898_v19 }
  0x1d   : > { %3886 = vmatprep.subr.bf16.mxu1 %v4784_v3  ;;  %3841 = vmatprep.subr.bf16.mxu0 %v4784_v3 }
  0x20   : > { %3888 = vmatpush1.bf16.msra.mxu1 %v4910_v22  ;;  %3843 = vmatpush1.bf16.msra.mxu0 %v4910_v22 }
  0x21   : > { %3889 = vmatprep.subr.bf16.mxu1 %v4784_v3  ;;  %3844 = vmatprep.subr.bf16.mxu0 %v4784_v3 }
  0x24   : > { %3891 = vmatpush1.bf16.msra.mxu1 %v4922_v25  ;;  %3846 = vmatpush1.bf16.msra.mxu0 %v4922_v25 }
  0x25   : > { %3892 = vmatprep.subr.bf16.mxu1 %v4784_v3  ;;  %3847 = vmatprep.subr.bf16.mxu0 %v4784_v3 }
  0x28   : > { %3894 = vmatpush1.bf16.msra.mxu1 %v4934_v28  ;;  %3849 = vmatpush1.bf16.msra.mxu0 %v4934_v28 }
  0x29   : > { %3895 = vmatprep.subr.bf16.mxu1 %v4784_v3  ;;  %3850 = vmatprep.subr.bf16.mxu0 %v4784_v3 }
  0x2c   : > { %3897 = vmatpush1.bf16.msra.mxu1 %v4946_v31  ;;  %3852 = vmatpush1.bf16.msra.mxu0 %v4946_v31 }
  0x2d   : > { %3898 = vmatprep.subr.bf16.mxu1 %v4784_v3  ;;  %3853 = vmatprep.subr.bf16.mxu0 %v4784_v3 }
  0x30   : > { %3900 = vmatpush1.bf16.msra.mxu1 %v4958_v34  ;;  %3855 = vmatpush1.bf16.msra.mxu0 %v4958_v34 }
  0x31   : > { %3901 = vmatprep.subr.bf16.mxu1 %v4784_v3  ;;  %3856 = vmatprep.subr.bf16.mxu0 %v4784_v3 }
  0x34   : > { %3903 = vmatpush1.bf16.msra.mxu1 %v4970_v37  ;;  %3858 = vmatpush1.bf16.msra.mxu0 %v4970_v37 }
  0x35   : > { %3904 = vmatprep.subr.bf16.mxu1 %v4784_v3  ;;  %3859 = vmatprep.subr.bf16.mxu0 %v4784_v3 }
  0x38   : > { %3906 = vmatpush1.bf16.msra.mxu1 %v4982_v40  ;;  %3861 = vmatpush1.bf16.msra.mxu0 %v4982_v40 }
  0x39   : > { %3907 = vmatprep.subr.bf16.mxu1 %v4784_v3  ;;  %3862 = vmatprep.subr.bf16.mxu0 %v4784_v3 }
  0x3c   : > { %3909 = vmatpush1.bf16.msra.mxu1 %v4994_v43  ;;  %3864 = vmatpush1.bf16.msra.mxu0 %v4994_v43 }
  0x3d   : > { %3910 = vmatprep.subr.bf16.mxu1 %v4784_v3  ;;  %3865 = vmatprep.subr.bf16.mxu0 %v4784_v3 }
  0x40   : > { %3912 = vmatpush1.bf16.msra.mxu1 %v5012_v48  ;;  %3867 = vmatpush1.bf16.msra.mxu0 %v5012_v48 }
  0x41   : > { %3914 = vmatprep.subr.bf16.mxu1 %v3913_v49  ;;  %3930 = vmatprep.subr.bf16.mxu0 %v3929_v42 }
  0x43   : > { %444 = vmatmul.mubr.f32.vlgmr.msra.gmra.mrb[0].mxu1 %v3158_v52  ;;  %332 = vmatmul.mubr.f32.vlgmr.msra.gmra.mrb[0].mxu0 %v256_v63  ;;  %v3941_v52 = vpack.c.bf16 %v367_v51, %v366_v50 }
  0x44   : > { %3163 = vmatprep.mubr.msk.f32.mxu1 %vm260_vm0, %v3161_v53  ;;  %3916 = vmatpush3.bf16.msra.mxu1 %v3913_v49  ;;  %v3937_v49 = vpack.c.bf16 %v365_v47, %v364_v46  ;;  %v3182_v53 = vld [vmem:[%s5994_s3 + $0x80] sm:$0xff] }
  0x45   : > { %3918 = vmatprep.subr.bf16.mxu1 %v3917_v54  ;;  %3157 = vmatprep.mubr.msk.f32.mxu0 %vm260_vm0, %v259_v0 }
  0x46   : > { %3932 = vmatpush3.bf16.msra.mxu0 %v3929_v42 }
  0x47   : > { %449 = vmatmul.mubr.f32.gmra.mrb[2].mxu1 %v3160_v55  ;;  %337 = vmatmul.mubr.f32.gmra.mrb[2].mxu0 %v258_v1 }
  0x48   : > { %3920 = vmatpush3.bf16.msra.mxu1 %v3917_v54  ;;  %3934 = vmatprep.subr.bf16.mxu0 %v3933_v45  ;;  %v3183_v54 = vld [vmem:[%s5994_s3 + $0x88] sm:$0xff] }
  0x49   : > { %3922 = vmatprep.subr.bf16.mxu1 %v3921_v58  ;;  %v3990_v55 = vpack.c.bf16 %v3183_v54, %v3182_v53  ;;  %v3198_v54 = vld [vmem:[%s5994_s3 + $0xc0] sm:$0xff] }
  0x4a   : > { %3936 = vmatpush3.bf16.msra.mxu0 %v3933_v45 }
  0x4b   : > { %3938 = vmatprep.subr.bf16.mxu0 %v3937_v49 }
  0x4c   : > { %3924 = vmatpush3.bf16.msra.mxu1 %v3921_v58 }
  0x4d   : > { %3926 = vmatprep.subr.bf16.mxu1 %v3925_v61 }
  0x4e   : > { %3940 = vmatpush3.bf16.msra.mxu0 %v3937_v49 }
  0x4f   : > { %3942 = vmatprep.subr.bf16.mxu0 %v3941_v52 }
  0x50   : > { %3928 = vmatpush3.bf16.msra.mxu1 %v3925_v61 }
  0x51   : > { %3945 = vmatprep.subr.bf16.mxu1 %v4784_v3 }
  0x52   : > { %3944 = vmatpush3.bf16.msra.mxu0 %v3941_v52  ;;  %v3193_v52 = vld [vmem:[%s4860_s10 + $0x68] sm:$0xff] }
  0x53   : > { %3991 = vmatprep.subr.bf16.mxu0 %v3990_v55 }
 0x116   : > { %v445_v14 = vpop.f32.mrb[0].mxu1  ;;  %v333_v56 = vpop.f32.mrb[0].mxu0 }
 0x117   : > { %v454_v15 = vmul.f32 %v445_v14, %v5051_v11  ;;  %v447_v17 = vpop.f32.mrb[1].mxu1  ;;  %v346_v57 = vmul.f32 %v5051_v11, %v333_v56  ;;  %v335_v58 = vpop.f32.mrb[1].mxu0  ;;  %v3186_v14 = vld [vmem:[%s5994_s3 + $0xa0] sm:$0xff] }
 0x118   : > { %v3201_v58 = vld [vmem:[%s5994_s3 + $0xd8] sm:$0xff] }
 0x119   : > { %v456_v18 = vadd.f32 %v454_v15, %v5053_v12  ;;  %v352_v59 = vadd.f32 %v5053_v12, %v346_v57  ;;  %v3187_v15 = vld [vmem:[%s5994_s3 + $0xa8] sm:$0xff]  ;;  %v3200_v57 = vld [vmem:[%s5994_s3 + $0xd0] sm:$0xff] }
 0x11a   : > { %v450_v20 = vpop.f32.mrb[2].mxu1  ;;  %v338_v60 = vpop.f32.mrb[2].mxu0  ;;  %v3998_v17 = vpack.c.bf16 %v3187_v15, %v3186_v14  ;;  %v3214_v14 = vld [vmem:[%s5994_s3 + $0x100] sm:$0xff]  ;;  %v3215_v15 = vld [vmem:[%s5994_s3 + $0x108] sm:$0xff] }
 0x11b   : > { %v460_v21 = vmul.f32 0.2, %v456_v18  ;;  %v455_v23 = vmul.f32 %v450_v20, %v5051_v11  ;;  %v452_v24 = vpop.f32.mrb[3].mxu1  ;;  %vm458_vm1 = vcmp.gt.f32.partialorder %v456_v18, 0.0  ;;  %v356_v61 = vmul.f32 0.2, %v352_v59 }
 0x11c   : > { %v347_v62 = vmul.f32 %v5051_v11, %v338_v60  ;;  %v340_v63 = vpop.f32.mrb[3].mxu0  ;;  %vm354_vm4 = vcmp.gt.f32.partialorder %v352_v59, 0.0  ;;  %v3189_v20 = vld [vmem:[%s5994_s3 + $0xb8] sm:$0xff]  ;;  %v3208_v24 = vld [vmem:[%s4860_s10 + $0x80] sm:$0xff] }
 0x11d   : > { %v457_v26 = vadd.f32 %v455_v23, %v5053_v12  ;;  %v462_v27 = vsel %vm458_vm1, %v456_v18, %v460_v21  ;;  %v358_v1 = vsel %vm354_vm4, %v352_v59, %v356_v61  ;;  %v3188_v18 = vld [vmem:[%s5994_s3 + $0xb0] sm:$0xff]  ;;  %v3209_v23 = vld [vmem:[%s4860_s10 + $0x88] sm:$0xff]  ;;  %v3192_v59 = vld [vmem:[%s4860_s10 + $0x60] sm:$0xff]  ;;  %v4055_v61 = vpack.c.bf16 %v3201_v58, %v3200_v57 }
 0x11e   : > { %3554 = vmatprep.mubr.msk.f32.mxu1 %vm473_vm2, %v462_v27  ;;  %v353_v0 = vadd.f32 %v5053_v12, %v347_v62  ;;  %3573 = vmatprep.mubr.msk.f32.mxu0 %vm473_vm2, %v358_v1  ;;  %v4002_v21 = vpack.c.bf16 %v3189_v20, %v3188_v18  ;;  %v3195_v60 = vld [vmem:[%s4860_s10 + $0x78] sm:$0x3f]  ;;  %v3194_v62 = vld [vmem:[%s4860_s10 + $0x70] sm:$0x3f]  ;;  %v3202_v1 = vld [vmem:[%s5994_s3 + $0xe0] sm:$0xff] }
 0x11f   : > { %vm459_vm3 = vcmp.gt.f32.partialorder %v457_v26, 0.0  ;;  %v461_v29 = vmul.f32 0.2, %v457_v26  ;;  %v4059_v5 = vpack.c.bf16 %v3203_v2, %v3202_v1  ;;  %v3274_v58 = vld [vmem:[%s4860_s10 + $0x110] sm:$0x3f] }
 0x120   : > { %vm355_vm5 = vcmp.gt.f32.partialorder %v353_v0, 0.0  ;;  %v357_v7 = vmul.f32 0.2, %v353_v0 }
 0x121   : > { %v463_v32 = vsel %vm459_vm3, %v457_v26, %v461_v29  ;;  %v3211_v29 = vld [vmem:[%s4860_s10 + $0x98] sm:$0x3f] }
 0x122   : > { %3555 = vmatmul.mubr.msk.f32.vlgmr.msra.gmra.mrb[4].mxu1 %vm473_vm2, %v463_v32  ;;  %v359_v10 = vsel %vm355_vm5, %v353_v0, %v357_v7  ;;  %v3225_v32 = vld [vmem:[%s4860_s10 + $0xa8] sm:$0xff]  ;;  %v3204_v7 = vld [vmem:[%s5994_s3 + $0xf0] sm:$0xff] }
 0x123   : > { %3947 = vmatpush1.bf16.msra.mxu1 %v4833_v4  ;;  %3180 = vmatprep.mubr.msk.f32.mxu1 %vm260_vm0, %v3177_v30  ;;  %v3210_v30 = vld [vmem:[%s4860_s10 + $0x90] sm:$0x3f] }
 0x124   : > { %3948 = vmatprep.subr.bf16.mxu1 %v4784_v3  ;;  %3574 = vmatmul.mubr.msk.f32.vlgmr.msra.gmra.mrb[4].mxu0 %vm473_vm2, %v359_v10 }
 0x125   : > { %3993 = vmatpush3.bf16.msra.mxu0 %v3990_v55  ;;  %v3199_v55 = vld [vmem:[%s5994_s3 + $0xc8] sm:$0xff] }
 0x126   : > { %3995 = vmatprep.subr.bf16.mxu0 %v3994_v8  ;;  %v4051_v56 = vpack.c.bf16 %v3199_v55, %v3198_v54  ;;  %v3216_v55 = vld [vmem:[%s5994_s3 + $0x110] sm:$0xff] }
 0x127   : > { %3950 = vmatpush1.bf16.msra.mxu1 %v4842_v6 }
 0x128   : > { %3951 = vmatprep.subr.bf16.mxu1 %v4784_v3 }
 0x129   : > { %3997 = vmatpush3.bf16.msra.mxu0 %v3994_v8  ;;  %v3205_v8 = vld [vmem:[%s5994_s3 + $0xf8] sm:$0xff] }
 0x12a   : > { %3999 = vmatprep.subr.bf16.mxu0 %v3998_v17  ;;  %v4063_v10 = vpack.c.bf16 %v3205_v8, %v3204_v7  ;;  %v3220_v7 = vld [vmem:[%s5994_s3 + $0x130] sm:$0xff]  ;;  %v3221_v8 = vld [vmem:[%s5994_s3 + $0x138] sm:$0xff] }
 0x12b   : > { %3953 = vmatpush1.bf16.msra.mxu1 %v4855_v9 }
 0x12c   : > { %3954 = vmatprep.subr.bf16.mxu1 %v4784_v3 }
 0x12d   : > { %4001 = vmatpush3.bf16.msra.mxu0 %v3998_v17  ;;  %v5329_v17 = vpack.c.bf16 %v3215_v15, %v3214_v14  ;;  %v4124_v14 = vpack.c.bf16 %v3221_v8, %v3220_v7  ;;  %v3263_v7 = vld [vmem:[%s5994_s3 + $0x1c8] sm:$0xff] }
 0x12e   : > { %4003 = vmatprep.subr.bf16.mxu0 %v4002_v21 }
 0x12f   : > { %3956 = vmatpush1.bf16.msra.mxu1 %v4873_v13 }
 0x130   : > { %3957 = vmatprep.subr.bf16.mxu1 %v4784_v3 }
 0x131   : > { %4005 = vmatpush3.bf16.msra.mxu0 %v4002_v21 }
 0x132   : > { %4006 = vmatprep.subr.bf16.mxu0 %v4784_v3 }
 0x133   : > { %3959 = vmatpush1.bf16.msra.mxu1 %v4886_v16 }
 0x134   : > { %3960 = vmatprep.subr.bf16.mxu1 %v4784_v3 }
 0x137   : > { %3962 = vmatpush1.bf16.msra.mxu1 %v4898_v19 }
 0x138   : > { %3963 = vmatprep.subr.bf16.mxu1 %v4784_v3 }
 0x13b   : > { %3965 = vmatpush1.bf16.msra.mxu1 %v4910_v22 }
 0x13c   : > { %3966 = vmatprep.subr.bf16.mxu1 %v4784_v3 }
 0x13f   : > { %3968 = vmatpush1.bf16.msra.mxu1 %v4922_v25 }
 0x140   : > { %3969 = vmatprep.subr.bf16.mxu1 %v4784_v3 }
 0x143   : > { %3971 = vmatpush1.bf16.msra.mxu1 %v4934_v28 }
 0x144   : > { %3972 = vmatprep.subr.bf16.mxu1 %v4784_v3 }
 0x147   : > { %3974 = vmatpush1.bf16.msra.mxu1 %v4946_v31 }
 0x148   : > { %3975 = vmatprep.subr.bf16.mxu1 %v4784_v3 }
 0x14b   : > { %3977 = vmatpush1.bf16.msra.mxu1 %v4958_v34 }
 0x14c   : > { %3978 = vmatprep.subr.bf16.mxu1 %v4784_v3 }
 0x14f   : > { %3980 = vmatpush1.bf16.msra.mxu1 %v4970_v37 }
 0x150   : > { %3981 = vmatprep.subr.bf16.mxu1 %v4784_v3 }
 0x153   : > { %3983 = vmatpush1.bf16.msra.mxu1 %v4982_v40 }
 0x154   : > { %3984 = vmatprep.subr.bf16.mxu1 %v4784_v3 }
 0x157   : > { %3986 = vmatpush1.bf16.msra.mxu1 %v4994_v43 }
 0x158   : > { %3987 = vmatprep.subr.bf16.mxu1 %v4784_v3 }
 0x15b   : > { %3989 = vmatpush1.bf16.msra.mxu1 %v5012_v48 }
 0x15c   : > { %4067 = vmatprep.subr.bf16.mxu1 %v4784_v3 }
 0x15e   : > { %712 = vmatmul.mubr.f32.vlgmr.msra.gmra.mrb[6].mxu1 %v3176_v33  ;;  %v3224_v33 = vld [vmem:[%s4860_s10 + $0xa0] sm:$0xff] }
 0x15f   : > { %3181 = vmatprep.mubr.msk.f32.mxu1 %vm260_vm0, %v3179_v35  ;;  %4069 = vmatpush1.bf16.msra.mxu1 %v4833_v4  ;;  %v3227_v35 = vld [vmem:[%s4860_s10 + $0xb8] sm:$0x3f] }
 0x160   : > { %4070 = vmatprep.subr.bf16.mxu1 %v4784_v3 }
 0x162   : > { %717 = vmatmul.mubr.f32.gmra.mrb[8].mxu1 %v3178_v36  ;;  %v3226_v36 = vld [vmem:[%s4860_s10 + $0xb0] sm:$0x3f] }
 0x163   : > { %4072 = vmatpush1.bf16.msra.mxu1 %v4842_v6  ;;  %3212 = vmatprep.mubr.msk.f32.mxu1 %vm260_vm0, %v3209_v23 }
 0x164   : > { %4073 = vmatprep.subr.bf16.mxu1 %v4784_v3 }
 0x167   : > { %4075 = vmatpush1.bf16.msra.mxu1 %v4855_v9 }
 0x168   : > { %4076 = vmatprep.subr.bf16.mxu1 %v4784_v3 }
 0x16b   : > { %4078 = vmatpush1.bf16.msra.mxu1 %v4873_v13 }
 0x16c   : > { %4079 = vmatprep.subr.bf16.mxu1 %v4784_v3 }
 0x16f   : > { %4081 = vmatpush1.bf16.msra.mxu1 %v4886_v16 }
 0x170   : > { %4082 = vmatprep.subr.bf16.mxu1 %v4784_v3 }
 0x173   : > { %4084 = vmatpush1.bf16.msra.mxu1 %v4898_v19 }
 0x174   : > { %4085 = vmatprep.subr.bf16.mxu1 %v4784_v3 }
 0x177   : > { %4087 = vmatpush1.bf16.msra.mxu1 %v4910_v22 }
 0x178   : > { %4088 = vmatprep.subr.bf16.mxu1 %v4784_v3 }
 0x17b   : > { %4090 = vmatpush1.bf16.msra.mxu1 %v4922_v25 }
 0x17c   : > { %4091 = vmatprep.subr.bf16.mxu1 %v4784_v3 }
 0x17f   : > { %4093 = vmatpush1.bf16.msra.mxu1 %v4934_v28 }
 0x180   : > { %4094 = vmatprep.subr.bf16.mxu1 %v4784_v3 }
 0x183   : > { %4096 = vmatpush1.bf16.msra.mxu1 %v4946_v31 }
 0x184   : > { %4097 = vmatprep.subr.bf16.mxu1 %v4784_v3 }
 0x187   : > { %4099 = vmatpush1.bf16.msra.mxu1 %v4958_v34 }
 0x188   : > { %4100 = vmatprep.subr.bf16.mxu1 %v4784_v3 }
 0x18b   : > { %4102 = vmatpush1.bf16.msra.mxu1 %v4970_v37 }
 0x18c   : > { %4103 = vmatprep.subr.bf16.mxu1 %v4784_v3 }
 0x18f   : > { %4105 = vmatpush1.bf16.msra.mxu1 %v4982_v40 }
 0x190   : > { %4106 = vmatprep.subr.bf16.mxu1 %v4784_v3 }
 0x193   : > { %4108 = vmatpush1.bf16.msra.mxu1 %v4994_v43 }
 0x194   : > { %4109 = vmatprep.subr.bf16.mxu1 %v4784_v3 }
 0x197   : > { %4111 = vmatpush1.bf16.msra.mxu1 %v5012_v48 }
 0x198   : > { %4128 = vmatprep.subr.bf16.mxu1 %v4784_v3 }
 0x19a   : > { %1088 = vmatmul.mubr.f32.vlgmr.msra.gmra.mrb[10].mxu1 %v3208_v24 }
 0x19b   : > { %4130 = vmatpush1.bf16.msra.mxu1 %v4833_v4  ;;  %3213 = vmatprep.mubr.msk.f32.mxu1 %vm260_vm0, %v3211_v29 }
 0x19c   : > { %4131 = vmatprep.subr.bf16.mxu1 %v4784_v3 }
 0x19e   : > { %1093 = vmatmul.mubr.f32.gmra.mrb[12].mxu1 %v3210_v30  ;;  %v3257_v30 = vld [vmem:[%s4860_s10 + $0xe8] sm:$0xff] }
 0x19f   : > { %4133 = vmatpush1.bf16.msra.mxu1 %v4842_v6  ;;  %3228 = vmatprep.mubr.msk.f32.mxu1 %vm260_vm0, %v3225_v32  ;;  %v3256_v32 = vld [vmem:[%s4860_s10 + $0xe0] sm:$0xff] }
 0x1a0   : > { %4134 = vmatprep.subr.bf16.mxu1 %v4784_v3 }
 0x1a3   : > { %4136 = vmatpush1.bf16.msra.mxu1 %v4855_v9 }
 0x1a4   : > { %4137 = vmatprep.subr.bf16.mxu1 %v4784_v3 }
 0x1a7   : > { %4139 = vmatpush1.bf16.msra.mxu1 %v4873_v13 }
 0x1a8   : > { %4140 = vmatprep.subr.bf16.mxu1 %v4784_v3 }
 0x1ab   : > { %4142 = vmatpush1.bf16.msra.mxu1 %v4886_v16 }
 0x1ac   : > { %4143 = vmatprep.subr.bf16.mxu1 %v4784_v3 }
 0x1af   : > { %4145 = vmatpush1.bf16.msra.mxu1 %v4898_v19 }
 0x1b0   : > { %4146 = vmatprep.subr.bf16.mxu1 %v4784_v3 }
 0x1b3   : > { %4148 = vmatpush1.bf16.msra.mxu1 %v4910_v22 }
 0x1b4   : > { %4149 = vmatprep.subr.bf16.mxu1 %v4784_v3 }
 0x1b7   : > { %4151 = vmatpush1.bf16.msra.mxu1 %v4922_v25 }
 0x1b8   : > { %4152 = vmatprep.subr.bf16.mxu1 %v4784_v3 }
 0x1bb   : > { %4154 = vmatpush1.bf16.msra.mxu1 %v4934_v28 }
 0x1bc   : > { %4155 = vmatprep.subr.bf16.mxu1 %v4784_v3 }
 0x1bf   : > { %4157 = vmatpush1.bf16.msra.mxu1 %v4946_v31 }
 0x1c0   : > { %4158 = vmatprep.subr.bf16.mxu1 %v4784_v3 }
 0x1c3   : > { %4160 = vmatpush1.bf16.msra.mxu1 %v4958_v34 }
 0x1c4   : > { %4161 = vmatprep.subr.bf16.mxu1 %v4784_v3 }
 0x1c7   : > { %4163 = vmatpush1.bf16.msra.mxu1 %v4970_v37 }
 0x1c8   : > { %4164 = vmatprep.subr.bf16.mxu1 %v4784_v3 }
 0x1cb   : > { %4166 = vmatpush1.bf16.msra.mxu1 %v4982_v40 }
 0x1cc   : > { %4167 = vmatprep.subr.bf16.mxu1 %v4784_v3 }
 0x1cf   : > { %4169 = vmatpush1.bf16.msra.mxu1 %v4994_v43 }
 0x1d0   : > { %4170 = vmatprep.subr.bf16.mxu1 %v4784_v3 }
 0x1d3   : > { %4172 = vmatpush1.bf16.msra.mxu1 %v5012_v48 }
 0x1d4   : > { %4250 = vmatprep.subr.bf16.mxu1 %v4784_v3 }
 0x1d6   : > { %1276 = vmatmul.mubr.f32.vlgmr.msra.gmra.mrb[14].mxu1 %v3224_v33  ;;  %v3259_v33 = vld [vmem:[%s4860_s10 + $0xf8] sm:$0x3f] }
 0x1d7   : > { %3229 = vmatprep.mubr.msk.f32.mxu1 %vm260_vm0, %v3227_v35  ;;  %4252 = vmatpush1.bf16.msra.mxu1 %v4833_v4  ;;  %v3258_v35 = vld [vmem:[%s4860_s10 + $0xf0] sm:$0x3f] }
 0x1d8   : > { %4253 = vmatprep.subr.bf16.mxu1 %v4784_v3 }
 0x1da   : > { %1281 = vmatmul.mubr.f32.gmra.mrb[16].mxu1 %v3226_v36  ;;  %v3273_v36 = vld [vmem:[%s4860_s10 + $0x108] sm:$0xff] }
 0x1db   : > { %4255 = vmatpush1.bf16.msra.mxu1 %v4842_v6  ;;  %3260 = vmatprep.mubr.msk.f32.mxu1 %vm260_vm0, %v3257_v30  ;;  %v3233_v30 = vld [vmem:[%s5994_s3 + $0x158] sm:$0xff] }
 0x1dc   : > { %4256 = vmatprep.subr.bf16.mxu1 %v4784_v3 }
 0x1df   : > { %4258 = vmatpush1.bf16.msra.mxu1 %v4855_v9 }
 0x1e0   : > { %4259 = vmatprep.subr.bf16.mxu1 %v4784_v3 }
 0x1e3   : > { %4261 = vmatpush1.bf16.msra.mxu1 %v4873_v13 }
 0x1e4   : > { %4262 = vmatprep.subr.bf16.mxu1 %v4784_v3 }
 0x1e7   : > { %4264 = vmatpush1.bf16.msra.mxu1 %v4886_v16 }
 0x1e8   : > { %4265 = vmatprep.subr.bf16.mxu1 %v4784_v3 }
 0x1eb   : > { %4267 = vmatpush1.bf16.msra.mxu1 %v4898_v19 }
 0x1ec   : > { %4268 = vmatprep.subr.bf16.mxu1 %v4784_v3 }
 0x1ef   : > { %4270 = vmatpush1.bf16.msra.mxu1 %v4910_v22 }
 0x1f0   : > { %4271 = vmatprep.subr.bf16.mxu1 %v4784_v3 }
 0x1f3   : > { %4273 = vmatpush1.bf16.msra.mxu1 %v4922_v25 }
 0x1f4   : > { %4274 = vmatprep.subr.bf16.mxu1 %v4784_v3 }
 0x1f5   : > { %v5197_v26 = vpop.f32.mrb[4].mxu1 }
 0x1f6   : > { %v5200_v27 = vpop.f32.mrb[5].mxu1 }
 0x1f7   : > { %4276 = vmatpush1.bf16.msra.mxu1 %v4934_v28 }
 0x1f8   : > { %4277 = vmatprep.subr.bf16.mxu1 %v4784_v3 }
 0x1fb   : > { %4279 = vmatpush1.bf16.msra.mxu1 %v4946_v31 }
 0x1fc   : > { %4280 = vmatprep.subr.bf16.mxu1 %v4784_v3 }
 0x1ff   : > { %4282 = vmatpush1.bf16.msra.mxu1 %v4958_v34 }
 0x200   : > { %4283 = vmatprep.subr.bf16.mxu1 %v4784_v3 }
 0x203   : > { %4285 = vmatpush1.bf16.msra.mxu1 %v4970_v37 }
 0x204   : > { %4286 = vmatprep.subr.bf16.mxu1 %v4784_v3 }
 0x207   : > { %4288 = vmatpush1.bf16.msra.mxu1 %v4982_v40 }
 0x208   : > { %4289 = vmatprep.subr.bf16.mxu1 %v4784_v3 }
 0x20b   : > { %4291 = vmatpush1.bf16.msra.mxu1 %v4994_v43 }
 0x20c   : > { %4292 = vmatprep.subr.bf16.mxu1 %v4784_v3 }
 0x20f   : > { %4294 = vmatpush1.bf16.msra.mxu1 %v5012_v48 }
 0x210   : > { %4311 = vmatprep.subr.bf16.mxu1 %v4784_v3 }
 0x212   : > { %1652 = vmatmul.mubr.f32.vlgmr.msra.gmra.mrb[18].mxu1 %v3256_v32 }
 0x213   : > { %4313 = vmatpush1.bf16.msra.mxu1 %v4833_v4  ;;  %3261 = vmatprep.mubr.msk.f32.mxu1 %vm260_vm0, %v3259_v33 }
 0x214   : > { %4314 = vmatprep.subr.bf16.mxu1 %v4784_v3 }
 0x216   : > { %1657 = vmatmul.mubr.f32.gmra.mrb[20].mxu1 %v3258_v35 }
 0x217   : > { %4316 = vmatpush1.bf16.msra.mxu1 %v4842_v6  ;;  %3276 = vmatprep.mubr.msk.f32.mxu1 %vm260_vm0, %v3273_v36  ;;  %v3234_v36 = vld [vmem:[%s5994_s3 + $0x160] sm:$0xff] }
 0x218   : > { %4317 = vmatprep.subr.bf16.mxu1 %v4784_v3 }
 0x21b   : > { %4319 = vmatpush1.bf16.msra.mxu1 %v4855_v9 }
 0x21c   : > { %4320 = vmatprep.subr.bf16.mxu1 %v4784_v3 }
 0x21f   : > { %4322 = vmatpush1.bf16.msra.mxu1 %v4873_v13 }
 0x220   : > { %4323 = vmatprep.subr.bf16.mxu1 %v4784_v3 }
 0x223   : > { %4325 = vmatpush1.bf16.msra.mxu1 %v4886_v16 }
 0x224   : > { %4326 = vmatprep.subr.bf16.mxu1 %v4784_v3 }
 0x227   : > { %4328 = vmatpush1.bf16.msra.mxu1 %v4898_v19 }
 0x228   : > { %4329 = vmatprep.subr.bf16.mxu1 %v4784_v3 }
 0x22b   : > { %4331 = vmatpush1.bf16.msra.mxu1 %v4910_v22 }
 0x22c   : > { %4332 = vmatprep.subr.bf16.mxu1 %v4784_v3 }
 0x22f   : > { %4334 = vmatpush1.bf16.msra.mxu1 %v4922_v25 }
 0x230   : > { %4335 = vmatprep.subr.bf16.mxu1 %v4784_v3 }
 0x231   : > { %v713_v38 = vpop.f32.mrb[6].mxu1 }
 0x232   : > { %v722_v39 = vmul.f32 %v713_v38, %v5051_v11  ;;  %v715_v41 = vpop.f32.mrb[7].mxu1 }
 0x233   : > { %4337 = vmatpush1.bf16.msra.mxu1 %v4934_v28 }
 0x234   : > { %v724_v42 = vadd.f32 %v722_v39, %v5053_v12  ;;  %4338 = vmatprep.subr.bf16.mxu1 %v4784_v3 }
 0x235   : > { %v718_v44 = vpop.f32.mrb[8].mxu1 }
 0x236   : > { %v728_v45 = vmul.f32 0.2, %v724_v42  ;;  %v723_v46 = vmul.f32 %v718_v44, %v5051_v11  ;;  %v720_v47 = vpop.f32.mrb[9].mxu1  ;;  %vm726_vm6 = vcmp.gt.f32.partialorder %v724_v42, 0.0 }
 0x237   : > { %4340 = vmatpush1.bf16.msra.mxu1 %v4946_v31  ;;  %v3272_v47 = vld [vmem:[%s4860_s10 + $0x100] sm:$0xff] }
 0x238   : > { %v725_v49 = vadd.f32 %v723_v46, %v5053_v12  ;;  %v730_v50 = vsel %vm726_vm6, %v724_v42, %v728_v45  ;;  %4341 = vmatprep.subr.bf16.mxu1 %v4784_v3 }
 0x239   : > { %3592 = vmatprep.mubr.msk.f32.mxu0 %vm473_vm2, %v730_v50 }
 0x23a   : > { %vm727_vm7 = vcmp.gt.f32.partialorder %v725_v49, 0.0  ;;  %v729_v51 = vmul.f32 0.2, %v725_v49 }
 0x23b   : > { %4343 = vmatpush1.bf16.msra.mxu1 %v4958_v34 }
 0x23c   : > { %v731_v53 = vsel %vm727_vm7, %v725_v49, %v729_v51  ;;  %4344 = vmatprep.subr.bf16.mxu1 %v4784_v3 }
 0x23d   : > { %3593 = vmatmul.mubr.msk.f32.vlgmr.msra.gmra.mrb[4].mxu0 %vm473_vm2, %v731_v53 }
 0x23e   : > { %4008 = vmatpush1.bf16.msra.mxu0 %v4833_v4  ;;  %3196 = vmatprep.mubr.msk.f32.mxu0 %vm260_vm0, %v3193_v52  ;;  %v3275_v52 = vld [vmem:[%s4860_s10 + $0x118] sm:$0x3f] }
 0x23f   : > { %4009 = vmatprep.subr.bf16.mxu0 %v4784_v3  ;;  %4346 = vmatpush1.bf16.msra.mxu1 %v4970_v37 }
 0x240   : > { %4347 = vmatprep.subr.bf16.mxu1 %v4784_v3 }
 0x242   : > { %4011 = vmatpush1.bf16.msra.mxu0 %v4842_v6 }
 0x243   : > { %4012 = vmatprep.subr.bf16.mxu0 %v4784_v3  ;;  %4349 = vmatpush1.bf16.msra.mxu1 %v4982_v40 }
 0x244   : > { %4350 = vmatprep.subr.bf16.mxu1 %v4784_v3 }
 0x246   : > { %4014 = vmatpush1.bf16.msra.mxu0 %v4855_v9 }
 0x247   : > { %4015 = vmatprep.subr.bf16.mxu0 %v4784_v3  ;;  %4352 = vmatpush1.bf16.msra.mxu1 %v4994_v43 }
 0x248   : > { %4353 = vmatprep.subr.bf16.mxu1 %v4784_v3 }
 0x24a   : > { %4017 = vmatpush1.bf16.msra.mxu0 %v4873_v13 }
 0x24b   : > { %4018 = vmatprep.subr.bf16.mxu0 %v4784_v3  ;;  %4355 = vmatpush1.bf16.msra.mxu1 %v5012_v48 }
 0x24c   : > { %4433 = vmatprep.subr.bf16.mxu1 %v4784_v3 }
 0x24e   : > { %4020 = vmatpush1.bf16.msra.mxu0 %v4886_v16  ;;  %1840 = vmatmul.mubr.f32.vlgmr.msra.gmra.mrb[22].mxu1 %v3272_v47 }
 0x24f   : > { %4021 = vmatprep.subr.bf16.mxu0 %v4784_v3  ;;  %3277 = vmatprep.mubr.msk.f32.mxu1 %vm260_vm0, %v3275_v52 }
 0x250   : > { %4435 = vmatpush1.bf16.msra.mxu1 %v4833_v4 }
 0x251   : > { %4436 = vmatprep.subr.bf16.mxu1 %v4784_v3 }
 0x252   : > { %4023 = vmatpush1.bf16.msra.mxu0 %v4898_v19  ;;  %1845 = vmatmul.mubr.f32.gmra.mrb[24].mxu1 %v3274_v58  ;;  %v3242_v58 = vld [vmem:[%s4860_s10 + $0xd0] sm:$0x3f] }
 0x253   : > { %4024 = vmatprep.subr.bf16.mxu0 %v4784_v3 }
 0x254   : > { %4438 = vmatpush1.bf16.msra.mxu1 %v4842_v6 }
 0x255   : > { %4439 = vmatprep.subr.bf16.mxu1 %v4784_v3 }
 0x256   : > { %4026 = vmatpush1.bf16.msra.mxu0 %v4910_v22 }
 0x257   : > { %4027 = vmatprep.subr.bf16.mxu0 %v4784_v3 }
 0x258   : > { %4441 = vmatpush1.bf16.msra.mxu1 %v4855_v9 }
 0x259   : > { %4442 = vmatprep.subr.bf16.mxu1 %v4784_v3 }
 0x25a   : > { %4029 = vmatpush1.bf16.msra.mxu0 %v4922_v25 }
 0x25b   : > { %4030 = vmatprep.subr.bf16.mxu0 %v4784_v3 }
 0x25c   : > { %4444 = vmatpush1.bf16.msra.mxu1 %v4873_v13 }
 0x25d   : > { %4445 = vmatprep.subr.bf16.mxu1 %v4784_v3 }
 0x25e   : > { %4032 = vmatpush1.bf16.msra.mxu0 %v4934_v28 }
 0x25f   : > { %4033 = vmatprep.subr.bf16.mxu0 %v4784_v3 }
 0x260   : > { %4447 = vmatpush1.bf16.msra.mxu1 %v4886_v16 }
 0x261   : > { %4448 = vmatprep.subr.bf16.mxu1 %v4784_v3 }
 0x262   : > { %4035 = vmatpush1.bf16.msra.mxu0 %v4946_v31 }
 0x263   : > { %4036 = vmatprep.subr.bf16.mxu0 %v4784_v3 }
 0x264   : > { %4450 = vmatpush1.bf16.msra.mxu1 %v4898_v19 }
 0x265   : > { %4451 = vmatprep.subr.bf16.mxu1 %v4784_v3 }
 0x266   : > { %4038 = vmatpush1.bf16.msra.mxu0 %v4958_v34 }
 0x267   : > { %4039 = vmatprep.subr.bf16.mxu0 %v4784_v3 }
 0x268   : > { %4453 = vmatpush1.bf16.msra.mxu1 %v4910_v22 }
 0x269   : > { %4454 = vmatprep.subr.bf16.mxu1 %v4784_v3 }
 0x26a   : > { %4041 = vmatpush1.bf16.msra.mxu0 %v4970_v37 }
 0x26b   : > { %4042 = vmatprep.subr.bf16.mxu0 %v4784_v3 }
 0x26c   : > { %4456 = vmatpush1.bf16.msra.mxu1 %v4922_v25 }
 0x26d   : > { %v1089_v63 = vpop.f32.mrb[10].mxu1  ;;  %4457 = vmatprep.subr.bf16.mxu1 %v4784_v3 }
 0x26e   : > { %4044 = vmatpush1.bf16.msra.mxu0 %v4982_v40  ;;  %v1091_v0 = vpop.f32.mrb[11].mxu1  ;;  %v1098_v38 = vmul.f32 %v1089_v63, %v5051_v11  ;;  %v3219_v63 = vld [vmem:[%s5994_s3 + $0x128] sm:$0xff] }
 0x26f   : > { %4045 = vmatprep.subr.bf16.mxu0 %v4784_v3 }
 0x270   : > { %v1100_v45 = vadd.f32 %v1098_v38, %v5053_v12  ;;  %v3235_v38 = vld [vmem:[%s5994_s3 + $0x168] sm:$0xff]  ;;  %4459 = vmatpush1.bf16.msra.mxu1 %v4934_v28 }
 0x271   : > { %v5332_v18 = vpop.f32.mrb[12].mxu1  ;;  %4460 = vmatprep.subr.bf16.mxu1 %v4784_v3 }
 0x272   : > { %4047 = vmatpush1.bf16.msra.mxu0 %v4994_v43  ;;  %v1096_v20 = vpop.f32.mrb[13].mxu1  ;;  %v1104_v57 = vmul.f32 0.2, %v1100_v45  ;;  %vm1102_vm10 = vcmp.gt.f32.partialorder %v1100_v45, 0.0  ;;  %v1099_v1 = vmul.f32 %v5332_v18, %v5051_v11  ;;  %v3231_v18 = vld [vmem:[%s5994_s3 + $0x148] sm:$0xff] }
 0x273   : > { %4048 = vmatprep.subr.bf16.mxu0 %v4784_v3 }
 0x274   : > { %v1106_v0 = vsel %vm1102_vm10, %v1100_v45, %v1104_v57  ;;  %4462 = vmatpush1.bf16.msra.mxu1 %v4946_v31 }
 0x275   : > { %4463 = vmatprep.subr.bf16.mxu1 %v4784_v3 }
 0x276   : > { %4050 = vmatpush1.bf16.msra.mxu0 %v5012_v48 }
 0x277   : > { %4052 = vmatprep.subr.bf16.mxu0 %v4051_v56 }
 0x278   : > { %4465 = vmatpush1.bf16.msra.mxu1 %v4958_v34 }
 0x279   : > { %900 = vmatmul.mubr.f32.vlgmr.msra.gmra.mrb[6].mxu0 %v3192_v59  ;;  %4466 = vmatprep.subr.bf16.mxu1 %v4784_v3 }
 0x27a   : > { %3197 = vmatprep.mubr.msk.f32.mxu0 %vm260_vm0, %v3195_v60  ;;  %4054 = vmatpush3.bf16.msra.mxu0 %v4051_v56  ;;  %v3217_v56 = vld [vmem:[%s5994_s3 + $0x118] sm:$0xff] }
 0x27b   : > { %4056 = vmatprep.subr.bf16.mxu0 %v4055_v61  ;;  %v4116_v60 = vpack.c.bf16 %v3217_v56, %v3216_v55  ;;  %v3240_v55 = vld [vmem:[%s4860_s10 + $0xc0] sm:$0xff]  ;;  %v3243_v56 = vld [vmem:[%s4860_s10 + $0xd8] sm:$0x3f] }
 0x27c   : > { %4468 = vmatpush1.bf16.msra.mxu1 %v4970_v37 }
 0x27d   : > { %905 = vmatmul.mubr.f32.gmra.mrb[8].mxu0 %v3194_v62  ;;  %v3218_v62 = vld [vmem:[%s5994_s3 + $0x120] sm:$0xff]  ;;  %4469 = vmatprep.subr.bf16.mxu1 %v4784_v3 }
 0x27e   : > { %4058 = vmatpush3.bf16.msra.mxu0 %v4055_v61  ;;  %v4120_v2 = vpack.c.bf16 %v3219_v63, %v3218_v62  ;;  %v3251_v62 = vld [vmem:[%s5994_s3 + $0x1a8] sm:$0xff] }
 0x27f   : > { %4060 = vmatprep.subr.bf16.mxu0 %v4059_v5 }
 0x280   : > { %4471 = vmatpush1.bf16.msra.mxu1 %v4982_v40 }
 0x281   : > { %4472 = vmatprep.subr.bf16.mxu1 %v4784_v3 }
 0x282   : > { %4062 = vmatpush3.bf16.msra.mxu0 %v4059_v5 }
 0x283   : > { %4064 = vmatprep.subr.bf16.mxu0 %v4063_v10 }
 0x284   : > { %4474 = vmatpush1.bf16.msra.mxu1 %v4994_v43 }
 0x285   : > { %4475 = vmatprep.subr.bf16.mxu1 %v4784_v3 }
 0x286   : > { %4066 = vmatpush3.bf16.msra.mxu0 %v4063_v10  ;;  %v1101_v10 = vadd.f32 %v1099_v1, %v5053_v12  ;;  %v3253_v1 = vld [vmem:[%s5994_s3 + $0x1b8] sm:$0xff] }
 0x287   : > { %4113 = vmatprep.subr.bf16.mxu0 %v5329_v17 }
 0x288   : > { %v1105_v20 = vmul.f32 0.2, %v1101_v10  ;;  %vm1103_vm11 = vcmp.gt.f32.partialorder %v1101_v10, 0.0  ;;  %4477 = vmatpush1.bf16.msra.mxu1 %v5012_v48 }
 0x289   : > { %4555 = vmatprep.subr.bf16.mxu1 %v4784_v3 }
 0x28a   : > { %v1107_v32 = vsel %vm1103_vm11, %v1101_v10, %v1105_v20 }
 0x2a9   : > { %v5334_v21 = vpop.f32.mrb[14].mxu1 }
 0x2aa   : > { %v1279_v23 = vpop.f32.mrb[15].mxu1  ;;  %v1286_v5 = vmul.f32 %v5334_v21, %v5051_v11 }
 0x2ac   : > { %v1288_v15 = vadd.f32 %v1286_v5, %v5053_v12  ;;  %v3262_v5 = vld [vmem:[%s5994_s3 + $0x1c0] sm:$0xff] }
 0x2ad   : > { %v5336_v24 = vpop.f32.mrb[16].mxu1  ;;  %v4295_v8 = vpack.c.bf16 %v3263_v7, %v3262_v5 }
 0x2ae   : > { %v1284_v29 = vpop.f32.mrb[17].mxu1  ;;  %v1292_v23 = vmul.f32 0.2, %v1288_v15  ;;  %vm1290_vm12 = vcmp.gt.f32.partialorder %v1288_v15, 0.0 }
 0x2af   : > { %v3232_v29 = vld [vmem:[%s5994_s3 + $0x150] sm:$0xff] }
 0x2b0   : > { %v4177_v33 = vpack.c.bf16 %v3233_v30, %v3232_v29  ;;  %v1294_v35 = vsel %vm1290_vm12, %v1288_v15, %v1292_v23  ;;  %v3304_v23 = vld [vmem:[%s4860_s10 + $0x140] sm:$0xff]  ;;  %v3307_v29 = vld [vmem:[%s4860_s10 + $0x158] sm:$0x3f]  ;;  %v3306_v30 = vld [vmem:[%s4860_s10 + $0x150] sm:$0x3f] }
 0x34c   : > { %v901_v39 = vpop.f32.mrb[6].mxu0 }
 0x34d   : > { %v910_v41 = vmul.f32 %v901_v39, %v5051_v11  ;;  %v903_v42 = vpop.f32.mrb[7].mxu0  ;;  %v1287_v39 = vmul.f32 %v5336_v24, %v5051_v11 }
 0x34e   : > { %v3236_v42 = vld [vmem:[%s5994_s3 + $0x170] sm:$0xff] }
 0x34f   : > { %v912_v44 = vadd.f32 %v910_v41, %v5053_v12  ;;  %v4181_v41 = vpack.c.bf16 %v3235_v38, %v3234_v36  ;;  %v1289_v24 = vadd.f32 %v1287_v39, %v5053_v12 }
 0x350   : > { %v906_v46 = vpop.f32.mrb[8].mxu0 }
 0x351   : > { %v916_v49 = vmul.f32 0.2, %v912_v44  ;;  %v911_v50 = vmul.f32 %v906_v46, %v5051_v11  ;;  %v908_v51 = vpop.f32.mrb[9].mxu0  ;;  %vm914_vm8 = vcmp.gt.f32.partialorder %v912_v44, 0.0  ;;  %v1293_v46 = vmul.f32 0.2, %v1289_v24 }
 0x352   : > { %vm1291_vm13 = vcmp.gt.f32.partialorder %v1289_v24, 0.0  ;;  %v3247_v51 = vld [vmem:[%s5994_s3 + $0x188] sm:$0xff] }
 0x353   : > { %v913_v53 = vadd.f32 %v911_v50, %v5053_v12  ;;  %v918_v54 = vsel %vm914_vm8, %v912_v44, %v916_v49  ;;  %v3237_v44 = vld [vmem:[%s5994_s3 + $0x178] sm:$0xff]  ;;  %v1295_v47 = vsel %vm1291_vm13, %v1289_v24, %v1293_v46  ;;  %v3241_v49 = vld [vmem:[%s4860_s10 + $0xc8] sm:$0xff]  ;;  %v3246_v50 = vld [vmem:[%s5994_s3 + $0x180] sm:$0xff] }
 0x354   : > { %3611 = vmatprep.mubr.msk.f32.mxu0 %vm473_vm2, %v918_v54  ;;  %v4185_v45 = vpack.c.bf16 %v3237_v44, %v3236_v42  ;;  %v4234_v52 = vpack.c.bf16 %v3247_v51, %v3246_v50  ;;  %v3249_v54 = vld [vmem:[%s5994_s3 + $0x198] sm:$0xff] }
 0x355   : > { %vm915_vm9 = vcmp.gt.f32.partialorder %v913_v53, 0.0  ;;  %v917_v59 = vmul.f32 0.2, %v913_v53 }
 0x357   : > { %v919_v61 = vsel %vm915_vm9, %v913_v53, %v917_v59  ;;  %v3248_v53 = vld [vmem:[%s5994_s3 + $0x190] sm:$0xff]  ;;  %v1653_v59 = vpop.f32.mrb[18].mxu1 }
 0x358   : > { %3612 = vmatmul.mubr.msk.f32.vlgmr.msra.gmra.mrb[4].mxu0 %vm473_vm2, %v919_v61  ;;  %v4238_v57 = vpack.c.bf16 %v3249_v54, %v3248_v53  ;;  %v3250_v61 = vld [vmem:[%s5994_s3 + $0x1a0] sm:$0xff] }
 0x359   : > { %4115 = vmatpush3.bf16.msra.mxu0 %v5329_v17  ;;  %3630 = vmatprep.mubr.msk.f32.mxu0 %vm473_vm2, %v1106_v0  ;;  %v3230_v17 = vld [vmem:[%s5994_s3 + $0x140] sm:$0xff]  ;;  %v4242_v63 = vpack.c.bf16 %v3251_v62, %v3250_v61  ;;  %v3252_v0 = vld [vmem:[%s5994_s3 + $0x1b0] sm:$0xff]  ;;  %v3269_v61 = vld [vmem:[%s5994_s3 + $0x1f8] sm:$0xff] }
 0x35a   : > { %4117 = vmatprep.subr.bf16.mxu0 %v4116_v60  ;;  %v4173_v21 = vpack.c.bf16 %v3231_v18, %v3230_v17  ;;  %v3266_v54 = vld [vmem:[%s5994_s3 + $0x1e0] sm:$0xff] }
 0x35d   : > { %4119 = vmatpush3.bf16.msra.mxu0 %v4116_v60  ;;  %v1655_v60 = vpop.f32.mrb[19].mxu1 }
 0x35e   : > { %4121 = vmatprep.subr.bf16.mxu0 %v4120_v2  ;;  %v1658_v10 = vpop.f32.mrb[20].mxu1  ;;  %v3268_v60 = vld [vmem:[%s5994_s3 + $0x1f0] sm:$0xff] }
 0x361   : > { %4123 = vmatpush3.bf16.msra.mxu0 %v4120_v2  ;;  %v4246_v2 = vpack.c.bf16 %v3253_v1, %v3252_v0  ;;  %v3278_v1 = vld [vmem:[%s5994_s3 + $0x200] sm:$0xff] }
 0x362   : > { %4125 = vmatprep.subr.bf16.mxu0 %v4124_v14 }
 0x365   : > { %4127 = vmatpush3.bf16.msra.mxu0 %v4124_v14  ;;  %v1660_v14 = vpop.f32.mrb[21].mxu1 }
 0x366   : > { %4174 = vmatprep.subr.bf16.mxu0 %v4173_v21  ;;  %v1841_v15 = vpop.f32.mrb[22].mxu1  ;;  %v3281_v14 = vld [vmem:[%s5994_s3 + $0x218] sm:$0xff] }
 0x367   : > { %v1843_v17 = vpop.f32.mrb[23].mxu1 }
 0x368   : > { %3631 = vmatmul.mubr.msk.f32.vlgmr.msra.gmra.mrb[4].mxu0 %vm473_vm2, %v1107_v32  ;;  %v5540_v18 = vpop.f32.mrb[24].mxu1  ;;  %v1662_v32 = vmul.f32 %v1653_v59, %v5051_v11  ;;  %v1850_v59 = vmul.f32 %v1841_v15, %v5051_v11 }
 0x369   : > { %4176 = vmatpush3.bf16.msra.mxu0 %v4173_v21  ;;  %3649 = vmatprep.mubr.msk.f32.mxu0 %vm473_vm2, %v1294_v35  ;;  %v1848_v20 = vpop.f32.mrb[25].mxu1  ;;  %v3305_v21 = vld [vmem:[%s4860_s10 + $0x148] sm:$0xff] }
 0x36a   : > { %4178 = vmatprep.subr.bf16.mxu0 %v4177_v33  ;;  %3308 = vmatprep.mubr.msk.f32.mxu1 %vm260_vm0, %v3305_v21  ;;  %v1664_v39 = vadd.f32 %v1662_v32, %v5053_v12  ;;  %v1852_v0 = vadd.f32 %v1850_v59, %v5053_v12  ;;  %v3282_v21 = vld [vmem:[%s5994_s3 + $0x220] sm:$0xff]  ;;  %v3284_v32 = vld [vmem:[%s5994_s3 + $0x230] sm:$0xff] }
 0x36b   : > { %2216 = vmatmul.mubr.f32.vlgmr.msra.gmra.mrb[26].mxu1 %v3304_v23  ;;  %v3283_v23 = vld [vmem:[%s5994_s3 + $0x228] sm:$0xff] }
 0x36c   : > { %3309 = vmatprep.mubr.msk.f32.mxu1 %vm260_vm0, %v3307_v29  ;;  %4557 = vmatpush1.bf16.msra.mxu1 %v4833_v4  ;;  %v1668_v50 = vmul.f32 0.2, %v1664_v39  ;;  %vm1666_vm1 = vcmp.gt.f32.partialorder %v1664_v39, 0.0  ;;  %vm1854_vm4 = vcmp.gt.f32.partialorder %v1852_v0, 0.0  ;;  %v1851_v29 = vmul.f32 %v5540_v18, %v5051_v11 }
 0x36d   : > { %4180 = vmatpush3.bf16.msra.mxu0 %v4177_v33  ;;  %4558 = vmatprep.subr.bf16.mxu1 %v4784_v3 }
 0x36e   : > { %4182 = vmatprep.subr.bf16.mxu0 %v4181_v41  ;;  %v1853_v18 = vadd.f32 %v1851_v29, %v5053_v12 }
 0x36f   : > { %2221 = vmatmul.mubr.f32.gmra.mrb[28].mxu1 %v3306_v30  ;;  %v4364_v30 = vpack.c.bf16 %v3283_v23, %v3282_v21 }
 0x370   : > { %4560 = vmatpush1.bf16.msra.mxu1 %v4842_v6  ;;  %vm1855_vm5 = vcmp.gt.f32.partialorder %v1853_v18, 0.0 }
 0x371   : > { %4184 = vmatpush3.bf16.msra.mxu0 %v4181_v41  ;;  %4561 = vmatprep.subr.bf16.mxu1 %v4784_v3 }
 0x372   : > { %4186 = vmatprep.subr.bf16.mxu0 %v4185_v45 }
 0x374   : > { %4563 = vmatpush1.bf16.msra.mxu1 %v4855_v9 }
 0x375   : > { %4188 = vmatpush3.bf16.msra.mxu0 %v4185_v45  ;;  %4564 = vmatprep.subr.bf16.mxu1 %v4784_v3 }
 0x376   : > { %4189 = vmatprep.subr.bf16.mxu0 %v4784_v3 }
 0x378   : > { %3650 = vmatmul.mubr.msk.f32.vlgmr.msra.gmra.mrb[4].mxu0 %vm473_vm2, %v1295_v47  ;;  %4566 = vmatpush1.bf16.msra.mxu1 %v4873_v13  ;;  %v3264_v47 = vld [vmem:[%s5994_s3 + $0x1d0] sm:$0xff] }
 0x379   : > { %4191 = vmatpush1.bf16.msra.mxu0 %v4833_v4  ;;  %3244 = vmatprep.mubr.msk.f32.mxu0 %vm260_vm0, %v3241_v49  ;;  %v3265_v49 = vld [vmem:[%s5994_s3 + $0x1d8] sm:$0xff] }
 0x37a   : > { %4192 = vmatprep.subr.bf16.mxu0 %v4784_v3  ;;  %4567 = vmatprep.subr.bf16.mxu1 %v4784_v3 }
 0x37c   : > { %4569 = vmatpush1.bf16.msra.mxu1 %v4886_v16 }
 0x37d   : > { %4194 = vmatpush1.bf16.msra.mxu0 %v4842_v6  ;;  %4570 = vmatprep.subr.bf16.mxu1 %v4784_v3 }
 0x37e   : > { %4195 = vmatprep.subr.bf16.mxu0 %v4784_v3 }
 0x380   : > { %4572 = vmatpush1.bf16.msra.mxu1 %v4898_v19 }
 0x381   : > { %4197 = vmatpush1.bf16.msra.mxu0 %v4855_v9  ;;  %4573 = vmatprep.subr.bf16.mxu1 %v4784_v3 }
 0x382   : > { %4198 = vmatprep.subr.bf16.mxu0 %v4784_v3 }
 0x384   : > { %4575 = vmatpush1.bf16.msra.mxu1 %v4910_v22 }
 0x385   : > { %4200 = vmatpush1.bf16.msra.mxu0 %v4873_v13  ;;  %4576 = vmatprep.subr.bf16.mxu1 %v4784_v3 }
 0x386   : > { %4201 = vmatprep.subr.bf16.mxu0 %v4784_v3 }
 0x388   : > { %4578 = vmatpush1.bf16.msra.mxu1 %v4922_v25 }
 0x389   : > { %4203 = vmatpush1.bf16.msra.mxu0 %v4886_v16  ;;  %4579 = vmatprep.subr.bf16.mxu1 %v4784_v3 }
 0x38a   : > { %4204 = vmatprep.subr.bf16.mxu0 %v4784_v3 }
 0x38c   : > { %4581 = vmatpush1.bf16.msra.mxu1 %v4934_v28 }
 0x38d   : > { %4206 = vmatpush1.bf16.msra.mxu0 %v4898_v19  ;;  %4582 = vmatprep.subr.bf16.mxu1 %v4784_v3 }
 0x38e   : > { %4207 = vmatprep.subr.bf16.mxu0 %v4784_v3 }
 0x390   : > { %4584 = vmatpush1.bf16.msra.mxu1 %v4946_v31 }
 0x391   : > { %4209 = vmatpush1.bf16.msra.mxu0 %v4910_v22  ;;  %4585 = vmatprep.subr.bf16.mxu1 %v4784_v3 }
 0x392   : > { %4210 = vmatprep.subr.bf16.mxu0 %v4784_v3 }
 0x394   : > { %4587 = vmatpush1.bf16.msra.mxu1 %v4958_v34 }
 0x395   : > { %4212 = vmatpush1.bf16.msra.mxu0 %v4922_v25  ;;  %4588 = vmatprep.subr.bf16.mxu1 %v4784_v3 }
 0x396   : > { %4213 = vmatprep.subr.bf16.mxu0 %v4784_v3 }
 0x398   : > { %4590 = vmatpush1.bf16.msra.mxu1 %v4970_v37 }
 0x399   : > { %4215 = vmatpush1.bf16.msra.mxu0 %v4934_v28  ;;  %4591 = vmatprep.subr.bf16.mxu1 %v4784_v3 }
 0x39a   : > { %4216 = vmatprep.subr.bf16.mxu0 %v4784_v3 }
 0x39c   : > { %4593 = vmatpush1.bf16.msra.mxu1 %v4982_v40 }
 0x39d   : > { %4218 = vmatpush1.bf16.msra.mxu0 %v4946_v31  ;;  %4594 = vmatprep.subr.bf16.mxu1 %v4784_v3 }
 0x39e   : > { %4219 = vmatprep.subr.bf16.mxu0 %v4784_v3 }
 0x3a0   : > { %4596 = vmatpush1.bf16.msra.mxu1 %v4994_v43 }
 0x3a1   : > { %4221 = vmatpush1.bf16.msra.mxu0 %v4958_v34  ;;  %4597 = vmatprep.subr.bf16.mxu1 %v4784_v3 }
 0x3a2   : > { %4222 = vmatprep.subr.bf16.mxu0 %v4784_v3 }
 0x3a4   : > { %4599 = vmatpush1.bf16.msra.mxu1 %v5012_v48 }
 0x3a5   : > { %4224 = vmatpush1.bf16.msra.mxu0 %v4970_v37  ;;  %4616 = vmatprep.subr.bf16.mxu1 %v4784_v3 }
 0x3a6   : > { %4225 = vmatprep.subr.bf16.mxu0 %v4784_v3 }
 0x3a9   : > { %4227 = vmatpush1.bf16.msra.mxu0 %v4982_v40 }
 0x3aa   : > { %4228 = vmatprep.subr.bf16.mxu0 %v4784_v3 }
 0x3ad   : > { %4230 = vmatpush1.bf16.msra.mxu0 %v4994_v43 }
 0x3ae   : > { %4231 = vmatprep.subr.bf16.mxu0 %v4784_v3 }
 0x3b1   : > { %4233 = vmatpush1.bf16.msra.mxu0 %v5012_v48 }
 0x3b2   : > { %4235 = vmatprep.subr.bf16.mxu0 %v4234_v52 }
 0x3b4   : > { %1464 = vmatmul.mubr.f32.vlgmr.msra.gmra.mrb[10].mxu0 %v3240_v55  ;;  %v3267_v55 = vld [vmem:[%s5994_s3 + $0x1e8] sm:$0xff] }
 0x3b5   : > { %3245 = vmatprep.mubr.msk.f32.mxu0 %vm260_vm0, %v3243_v56  ;;  %4237 = vmatpush3.bf16.msra.mxu0 %v4234_v52  ;;  %v4299_v52 = vpack.c.bf16 %v3265_v49, %v3264_v47  ;;  %v1670_v56 = vsel %vm1666_vm1, %v1664_v39, %v1668_v50  ;;  %v3289_v39 = vld [vmem:[%s4860_s10 + $0x128] sm:$0xff]  ;;  %v3291_v47 = vld [vmem:[%s4860_s10 + $0x138] sm:$0x3f]  ;;  %v3290_v50 = vld [vmem:[%s4860_s10 + $0x130] sm:$0x3f] }
 0x3b6   : > { %4239 = vmatprep.subr.bf16.mxu0 %v4238_v57 }
 0x3b8   : > { %1469 = vmatmul.mubr.f32.gmra.mrb[12].mxu0 %v3242_v58  ;;  %v4303_v58 = vpack.c.bf16 %v3267_v55, %v3266_v54  ;;  %v3300_v54 = vld [vmem:[%s5994_s3 + $0x270] sm:$0xff]  ;;  %v3301_v55 = vld [vmem:[%s5994_s3 + $0x278] sm:$0xff] }
 0x3b9   : > { %4241 = vmatpush3.bf16.msra.mxu0 %v4238_v57  ;;  %v1663_v57 = vmul.f32 %v1658_v10, %v5051_v11  ;;  %v3280_v10 = vld [vmem:[%s5994_s3 + $0x210] sm:$0xff] }
 0x3ba   : > { %4243 = vmatprep.subr.bf16.mxu0 %v4242_v63  ;;  %v4360_v17 = vpack.c.bf16 %v3281_v14, %v3280_v10  ;;  %v3355_v10 = vld [vmem:[%s4860_s10 + $0x1b8] sm:$0x3f]  ;;  %v3354_v14 = vld [vmem:[%s4860_s10 + $0x1b0] sm:$0x3f] }
 0x3bb   : > { %v1665_v62 = vadd.f32 %v1663_v57, %v5053_v12  ;;  %v3310_v57 = vld [vmem:[%s5994_s3 + $0x280] sm:$0xff] }
 0x3bd   : > { %4245 = vmatpush3.bf16.msra.mxu0 %v4242_v63  ;;  %v4307_v63 = vpack.c.bf16 %v3269_v61, %v3268_v60  ;;  %v1669_v5 = vmul.f32 0.2, %v1665_v62  ;;  %vm1667_vm3 = vcmp.gt.f32.partialorder %v1665_v62, 0.0 }
 0x3be   : > { %4247 = vmatprep.subr.bf16.mxu0 %v4246_v2 }
 0x3bf   : > { %v1671_v15 = vsel %vm1667_vm3, %v1665_v62, %v1669_v5  ;;  %v3338_v5 = vld [vmem:[%s4860_s10 + $0x190] sm:$0x3f]  ;;  %vm3091_vm3 = vcmask 259072  }
 0x3c1   : > { %4249 = vmatpush3.bf16.msra.mxu0 %v4246_v2  ;;  %v3279_v2 = vld [vmem:[%s5994_s3 + $0x208] sm:$0xff] }
 0x3c2   : > { %4296 = vmatprep.subr.bf16.mxu0 %v4295_v8  ;;  %v4356_v7 = vpack.c.bf16 %v3279_v2, %v3278_v1  ;;  %v3336_v1 = vld [vmem:[%s4860_s10 + $0x180] sm:$0xff]  ;;  %v3339_v2 = vld [vmem:[%s4860_s10 + $0x198] sm:$0x3f] }
 0x43e   : > { %v2217_v60 = vpop.f32.mrb[26].mxu1 }
 0x43f   : > { %v2219_v61 = vpop.f32.mrb[27].mxu1 }
 0x440   : > { %v3328_v61 = vld [vmem:[%s5994_s3 + $0x2d0] sm:$0xff] }
 0x442   : > { %v5708_v62 = vpop.f32.mrb[28].mxu1 }
 0x487   : > { %v1465_v33 = vpop.f32.mrb[10].mxu0 }
 0x488   : > { %v1474_v35 = vmul.f32 %v1465_v33, %v5051_v11  ;;  %v1467_v36 = vpop.f32.mrb[11].mxu0  ;;  %v3285_v33 = vld [vmem:[%s5994_s3 + $0x238] sm:$0xff] }
 0x489   : > { %v1857_v36 = vmul.f32 0.2, %v1853_v18 }
 0x48a   : > { %v1476_v38 = vadd.f32 %v1474_v35, %v5053_v12  ;;  %v4368_v35 = vpack.c.bf16 %v3285_v33, %v3284_v32 }
 0x48b   : > { %v1470_v41 = vpop.f32.mrb[12].mxu0 }
 0x48c   : > { %v1480_v42 = vmul.f32 0.2, %v1476_v38  ;;  %v1475_v44 = vmul.f32 %v1470_v41, %v5051_v11  ;;  %v1472_v24 = vpop.f32.mrb[13].mxu0  ;;  %vm1478_vm14 = vcmp.gt.f32.partialorder %v1476_v38, 0.0  ;;  %v3294_v41 = vld [vmem:[%s5994_s3 + $0x240] sm:$0xff] }
 0x48d   : > { %v3296_v24 = vld [vmem:[%s5994_s3 + $0x250] sm:$0xff] }
 0x48e   : > { %v1477_v45 = vadd.f32 %v1475_v44, %v5053_v12  ;;  %v1482_v46 = vsel %vm1478_vm14, %v1476_v38, %v1480_v42  ;;  %v1859_v38 = vsel %vm1855_vm5, %v1853_v18, %v1857_v36  ;;  %v3295_v42 = vld [vmem:[%s5994_s3 + $0x248] sm:$0xff] }
 0x48f   : > { %3668 = vmatprep.mubr.msk.f32.mxu0 %vm473_vm2, %v1482_v46  ;;  %v4417_v44 = vpack.c.bf16 %v3295_v42, %v3294_v41  ;;  %v3288_v46 = vld [vmem:[%s4860_s10 + $0x120] sm:$0xff]  ;;  %v3313_v41 = vld [vmem:[%s5994_s3 + $0x298] sm:$0xff] }
 0x490   : > { %vm1479_vm15 = vcmp.gt.f32.partialorder %v1477_v45, 0.0  ;;  %v1481_v51 = vmul.f32 0.2, %v1477_v45 }
 0x492   : > { %v1483_v53 = vsel %vm1479_vm15, %v1477_v45, %v1481_v51  ;;  %v3297_v45 = vld [vmem:[%s5994_s3 + $0x258] sm:$0xff]  ;;  %v3298_v51 = vld [vmem:[%s5994_s3 + $0x260] sm:$0xff] }
 0x493   : > { %3669 = vmatmul.mubr.msk.f32.vlgmr.msra.gmra.mrb[4].mxu0 %vm473_vm2, %v1483_v53  ;;  %v4421_v49 = vpack.c.bf16 %v3297_v45, %v3296_v24 }
 0x494   : > { %4298 = vmatpush3.bf16.msra.mxu0 %v4295_v8  ;;  %3687 = vmatprep.mubr.msk.f32.mxu0 %vm473_vm2, %v1670_v56  ;;  %v1856_v8 = vmul.f32 0.2, %v1852_v0  ;;  %v4429_v56 = vpack.c.bf16 %v3301_v55, %v3300_v54 }
 0x495   : > { %4300 = vmatprep.subr.bf16.mxu0 %v4299_v52 }
 0x496   : > { %v1858_v20 = vsel %vm1854_vm4, %v1852_v0, %v1856_v8  ;;  %v3337_v0 = vld [vmem:[%s4860_s10 + $0x188] sm:$0xff]  ;;  %v3352_v8 = vld [vmem:[%s4860_s10 + $0x1a0] sm:$0xff]  ;;  %vm3089_vm4 = vcmask 261120  }
 0x497   : > { %3340 = vmatprep.mubr.msk.f32.mxu1 %vm260_vm0, %v3337_v0  ;;  %v3323_v0 = vld [vmem:[%s4860_s10 + $0x178] sm:$0x3f] }
 0x498   : > { %4302 = vmatpush3.bf16.msra.mxu0 %v4299_v52  ;;  %v3299_v52 = vld [vmem:[%s5994_s3 + $0x268] sm:$0xff]  ;;  %2592 = vmatmul.mubr.f32.vlgmr.msra.gmra.mrb[30].mxu1 %v3336_v1 }
 0x499   : > { %4304 = vmatprep.subr.bf16.mxu0 %v4303_v58  ;;  %v4425_v53 = vpack.c.bf16 %v3299_v52, %v3298_v51  ;;  %4618 = vmatpush1.bf16.msra.mxu1 %v4833_v4  ;;  %v3316_v51 = vld [vmem:[%s5994_s3 + $0x2b0] sm:$0xff]  ;;  %v3317_v52 = vld [vmem:[%s5994_s3 + $0x2b8] sm:$0xff] }
 0x49a   : > { %4619 = vmatprep.subr.bf16.mxu1 %v4784_v3  ;;  %3341 = vmatprep.mubr.msk.f32.mxu1 %vm260_vm0, %v3339_v2  ;;  %v4490_v54 = vpack.c.bf16 %v3317_v52, %v3316_v51  ;;  %v3322_v2 = vld [vmem:[%s4860_s10 + $0x170] sm:$0x3f]  ;;  %v3365_v52 = vld [vmem:[%s5994_s3 + $0x378] sm:$0xff] }
 0x49b   : > { %v3364_v51 = vld [vmem:[%s5994_s3 + $0x370] sm:$0xff] }
 0x49c   : > { %4306 = vmatpush3.bf16.msra.mxu0 %v4303_v58  ;;  %v3311_v58 = vld [vmem:[%s5994_s3 + $0x288] sm:$0xff]  ;;  %2597 = vmatmul.mubr.f32.gmra.mrb[32].mxu1 %v3338_v5  ;;  %v3330_v5 = vld [vmem:[%s5994_s3 + $0x2e0] sm:$0xff] }
 0x49d   : > { %4308 = vmatprep.subr.bf16.mxu0 %v4307_v63  ;;  %v5705_v59 = vpack.c.bf16 %v3311_v58, %v3310_v57  ;;  %4621 = vmatpush1.bf16.msra.mxu1 %v4842_v6  ;;  %v3321_v57 = vld [vmem:[%s4860_s10 + $0x168] sm:$0xff]  ;;  %v3326_v58 = vld [vmem:[%s5994_s3 + $0x2c0] sm:$0xff] }
 0x49e   : > { %4622 = vmatprep.subr.bf16.mxu1 %v4784_v3 }
 0x4a0   : > { %4310 = vmatpush3.bf16.msra.mxu0 %v4307_v63  ;;  %v2224_v63 = vpop.f32.mrb[29].mxu1 }
 0x4a1   : > { %4357 = vmatprep.subr.bf16.mxu0 %v4356_v7  ;;  %4624 = vmatpush1.bf16.msra.mxu1 %v4855_v9  ;;  %v3320_v63 = vld [vmem:[%s4860_s10 + $0x160] sm:$0xff] }
 0x4a2   : > { %4625 = vmatprep.subr.bf16.mxu1 %v4784_v3 }
 0x4a3   : > { %3688 = vmatmul.mubr.msk.f32.vlgmr.msra.gmra.mrb[4].mxu0 %vm473_vm2, %v1671_v15  ;;  %v2226_v15 = vmul.f32 %v2217_v60, %v5051_v11 }
 0x4a4   : > { %4359 = vmatpush3.bf16.msra.mxu0 %v4356_v7  ;;  %3706 = vmatprep.mubr.msk.f32.mxu0 %vm473_vm2, %v1858_v20  ;;  %v3353_v7 = vld [vmem:[%s4860_s10 + $0x1a8] sm:$0xff] }
 0x4a5   : > { %4361 = vmatprep.subr.bf16.mxu0 %v4360_v17  ;;  %4627 = vmatpush1.bf16.msra.mxu1 %v4873_v13  ;;  %v2228_v23 = vadd.f32 %v2226_v15, %v5053_v12 }
 0x4a6   : > { %4628 = vmatprep.subr.bf16.mxu1 %v4784_v3  ;;  %3356 = vmatprep.mubr.msk.f32.mxu1 %vm260_vm0, %v3353_v7  ;;  %v3331_v7 = vld [vmem:[%s5994_s3 + $0x2e8] sm:$0xff] }
 0x4a7   : > { %vm2230_vm7 = vcmp.gt.f32.partialorder %v2228_v23, 0.0 }
 0x4a8   : > { %4363 = vmatpush3.bf16.msra.mxu0 %v4360_v17 }
 0x4a9   : > { %4365 = vmatprep.subr.bf16.mxu0 %v4364_v30  ;;  %4630 = vmatpush1.bf16.msra.mxu1 %v4886_v16 }
 0x4aa   : > { %4631 = vmatprep.subr.bf16.mxu1 %v4784_v3 }
 0x4ac   : > { %4367 = vmatpush3.bf16.msra.mxu0 %v4364_v30 }
 0x4ad   : > { %4369 = vmatprep.subr.bf16.mxu0 %v4368_v35  ;;  %4633 = vmatpush1.bf16.msra.mxu1 %v4898_v19 }
 0x4ae   : > { %4634 = vmatprep.subr.bf16.mxu1 %v4784_v3 }
 0x4b0   : > { %4371 = vmatpush3.bf16.msra.mxu0 %v4368_v35  ;;  %v2232_v35 = vmul.f32 0.2, %v2228_v23 }
 0x4b1   : > { %4372 = vmatprep.subr.bf16.mxu0 %v4784_v3  ;;  %4636 = vmatpush1.bf16.msra.mxu1 %v4910_v22 }
 0x4b2   : > { %4637 = vmatprep.subr.bf16.mxu1 %v4784_v3  ;;  %v2234_v24 = vsel %vm2230_vm7, %v2228_v23, %v2232_v35  ;;  %v3358_v23 = vld [vmem:[%s5994_s3 + $0x340] sm:$0xff]  ;;  %v3361_v35 = vld [vmem:[%s5994_s3 + $0x358] sm:$0xff] }
 0x4b3   : > { %3707 = vmatmul.mubr.msk.f32.vlgmr.msra.gmra.mrb[4].mxu0 %vm473_vm2, %v1859_v38 }
 0x4b4   : > { %4374 = vmatpush1.bf16.msra.mxu0 %v4833_v4  ;;  %3292 = vmatprep.mubr.msk.f32.mxu0 %vm260_vm0, %v3289_v39  ;;  %v3312_v39 = vld [vmem:[%s5994_s3 + $0x290] sm:$0xff] }
 0x4b5   : > { %4375 = vmatprep.subr.bf16.mxu0 %v4784_v3  ;;  %4639 = vmatpush1.bf16.msra.mxu1 %v4922_v25 }
 0x4b6   : > { %4640 = vmatprep.subr.bf16.mxu1 %v4784_v3 }
 0x4b8   : > { %4377 = vmatpush1.bf16.msra.mxu0 %v4842_v6 }
 0x4b9   : > { %4378 = vmatprep.subr.bf16.mxu0 %v4784_v3  ;;  %4642 = vmatpush1.bf16.msra.mxu1 %v4934_v28 }
 0x4ba   : > { %4643 = vmatprep.subr.bf16.mxu1 %v4784_v3 }
 0x4bc   : > { %4380 = vmatpush1.bf16.msra.mxu0 %v4855_v9 }
 0x4bd   : > { %4381 = vmatprep.subr.bf16.mxu0 %v4784_v3  ;;  %4645 = vmatpush1.bf16.msra.mxu1 %v4946_v31 }
 0x4be   : > { %4646 = vmatprep.subr.bf16.mxu1 %v4784_v3 }
 0x4c0   : > { %4383 = vmatpush1.bf16.msra.mxu0 %v4873_v13 }
 0x4c1   : > { %4384 = vmatprep.subr.bf16.mxu0 %v4784_v3  ;;  %4648 = vmatpush1.bf16.msra.mxu1 %v4958_v34 }
 0x4c2   : > { %4649 = vmatprep.subr.bf16.mxu1 %v4784_v3 }
 0x4c4   : > { %4386 = vmatpush1.bf16.msra.mxu0 %v4886_v16 }
 0x4c5   : > { %4387 = vmatprep.subr.bf16.mxu0 %v4784_v3  ;;  %4651 = vmatpush1.bf16.msra.mxu1 %v4970_v37 }
 0x4c6   : > { %4652 = vmatprep.subr.bf16.mxu1 %v4784_v3 }
 0x4c8   : > { %4389 = vmatpush1.bf16.msra.mxu0 %v4898_v19 }
 0x4c9   : > { %4390 = vmatprep.subr.bf16.mxu0 %v4784_v3  ;;  %4654 = vmatpush1.bf16.msra.mxu1 %v4982_v40 }
 0x4ca   : > { %4655 = vmatprep.subr.bf16.mxu1 %v4784_v3 }
 0x4cc   : > { %4392 = vmatpush1.bf16.msra.mxu0 %v4910_v22 }
 0x4cd   : > { %4393 = vmatprep.subr.bf16.mxu0 %v4784_v3  ;;  %4657 = vmatpush1.bf16.msra.mxu1 %v4994_v43 }
 0x4ce   : > { %4658 = vmatprep.subr.bf16.mxu1 %v4784_v3 }
 0x4d0   : > { %4395 = vmatpush1.bf16.msra.mxu0 %v4922_v25 }
 0x4d1   : > { %4396 = vmatprep.subr.bf16.mxu0 %v4784_v3  ;;  %4660 = vmatpush1.bf16.msra.mxu1 %v5012_v48 }
 0x4d4   : > { %4398 = vmatpush1.bf16.msra.mxu0 %v4934_v28  ;;  %2780 = vmatmul.mubr.f32.vlgmr.msra.gmra.mrb[34].mxu1 %v3352_v8  ;;  %v4547_v8 = vpack.c.bf16 %v3331_v7, %v3330_v5 }
 0x4d5   : > { %4399 = vmatprep.subr.bf16.mxu0 %v4784_v3  ;;  %3357 = vmatprep.mubr.msk.f32.mxu1 %vm260_vm0, %v3355_v10  ;;  %v3332_v10 = vld [vmem:[%s5994_s3 + $0x2f0] sm:$0xff] }
 0x4d8   : > { %4401 = vmatpush1.bf16.msra.mxu0 %v4946_v31  ;;  %2785 = vmatmul.mubr.f32.gmra.mrb[36].mxu1 %v3354_v14  ;;  %v3333_v14 = vld [vmem:[%s5994_s3 + $0x2f8] sm:$0xff] }
 0x4d9   : > { %4402 = vmatprep.subr.bf16.mxu0 %v4784_v3  ;;  %v4551_v15 = vpack.c.bf16 %v3333_v14, %v3332_v10 }
 0x4dc   : > { %4404 = vmatpush1.bf16.msra.mxu0 %v4958_v34 }
 0x4dd   : > { %4405 = vmatprep.subr.bf16.mxu0 %v4784_v3 }
 0x4e0   : > { %4407 = vmatpush1.bf16.msra.mxu0 %v4970_v37 }
 0x4e1   : > { %4408 = vmatprep.subr.bf16.mxu0 %v4784_v3 }
 0x4e4   : > { %4410 = vmatpush1.bf16.msra.mxu0 %v4982_v40 }
 0x4e5   : > { %4411 = vmatprep.subr.bf16.mxu0 %v4784_v3 }
 0x4e8   : > { %4413 = vmatpush1.bf16.msra.mxu0 %v4994_v43 }
 0x4e9   : > { %4414 = vmatprep.subr.bf16.mxu0 %v4784_v3 }
 0x4ec   : > { %4416 = vmatpush1.bf16.msra.mxu0 %v5012_v48 }
 0x4ed   : > { %4418 = vmatprep.subr.bf16.mxu0 %v4417_v44 }
 0x4ef   : > { %2028 = vmatmul.mubr.f32.vlgmr.msra.gmra.mrb[14].mxu0 %v3288_v46  ;;  %v3314_v46 = vld [vmem:[%s5994_s3 + $0x2a0] sm:$0xff] }
 0x4f0   : > { %3293 = vmatprep.mubr.msk.f32.mxu0 %vm260_vm0, %v3291_v47  ;;  %4420 = vmatpush3.bf16.msra.mxu0 %v4417_v44  ;;  %v4482_v44 = vpack.c.bf16 %v3313_v41, %v3312_v39  ;;  %v3315_v47 = vld [vmem:[%s5994_s3 + $0x2a8] sm:$0xff] }
 0x4f1   : > { %4422 = vmatprep.subr.bf16.mxu0 %v4421_v49 }
 0x4f3   : > { %2033 = vmatmul.mubr.f32.gmra.mrb[16].mxu0 %v3290_v50  ;;  %v4486_v50 = vpack.c.bf16 %v3315_v47, %v3314_v46 }
 0x4f4   : > { %4424 = vmatpush3.bf16.msra.mxu0 %v4421_v49  ;;  %v2227_v49 = vmul.f32 %v5708_v62, %v5051_v11  ;;  %v3329_v62 = vld [vmem:[%s5994_s3 + $0x2d8] sm:$0xff] }
 0x4f5   : > { %4426 = vmatprep.subr.bf16.mxu0 %v4425_v53  ;;  %v4543_v1 = vpack.c.bf16 %v3329_v62, %v3328_v61 }
 0x4f8   : > { %4428 = vmatpush3.bf16.msra.mxu0 %v4425_v53  ;;  %v2229_v53 = vadd.f32 %v2227_v49, %v5053_v12 }
 0x4f9   : > { %4430 = vmatprep.subr.bf16.mxu0 %v4429_v56 }
 0x4fa   : > { %v2233_v55 = vmul.f32 0.2, %v2229_v53  ;;  %vm2231_vm9 = vcmp.gt.f32.partialorder %v2229_v53, 0.0 }
 0x4fc   : > { %4432 = vmatpush3.bf16.msra.mxu0 %v4429_v56  ;;  %v2235_v56 = vsel %vm2231_vm9, %v2229_v53, %v2233_v55  ;;  %v4673_v55 = vpack.c.bf16 %v3365_v52, %v3364_v51 }
 0x4fd   : > { %4479 = vmatprep.subr.bf16.mxu0 %v5705_v59 }
 0x5c2   : > { %v2029_v17 = vpop.f32.mrb[14].mxu0 }
 0x5c3   : > { %v2038_v20 = vmul.f32 %v2029_v17, %v5051_v11  ;;  %v2031_v21 = vpop.f32.mrb[15].mxu0  ;;  %v3342_v17 = vld [vmem:[%s5994_s3 + $0x300] sm:$0xff] }
 0x5c5   : > { %v2040_v29 = vadd.f32 %v2038_v20, %v5053_v12  ;;  %v3343_v20 = vld [vmem:[%s5994_s3 + $0x308] sm:$0xff] }
 0x5c6   : > { %v2034_v30 = vpop.f32.mrb[16].mxu0  ;;  %v5849_v21 = vpack.c.bf16 %v3343_v20, %v3342_v17  ;;  %v3344_v17 = vld [vmem:[%s5994_s3 + $0x310] sm:$0xff]  ;;  %v3345_v20 = vld [vmem:[%s5994_s3 + $0x318] sm:$0xff] }
 0x5c7   : > { %v2044_v32 = vmul.f32 0.2, %v2040_v29  ;;  %v2039_v33 = vmul.f32 %v2034_v30, %v5051_v11  ;;  %v2036_v18 = vpop.f32.mrb[17].mxu0  ;;  %vm2042_vm6 = vcmp.gt.f32.partialorder %v2040_v29, 0.0 }
 0x5c8   : > { %v3360_v18 = vld [vmem:[%s5994_s3 + $0x350] sm:$0xff] }
 0x5c9   : > { %v2041_v36 = vadd.f32 %v2039_v33, %v5053_v12  ;;  %v2046_v38 = vsel %vm2042_vm6, %v2040_v29, %v2044_v32  ;;  %v3359_v29 = vld [vmem:[%s5994_s3 + $0x348] sm:$0xff]  ;;  %v2593_v32 = vpop.f32.mrb[30].mxu1 }
 0x5ca   : > { %3725 = vmatprep.mubr.msk.f32.mxu0 %vm473_vm2, %v2046_v38  ;;  %v4661_v30 = vpack.c.bf16 %v3359_v29, %v3358_v23  ;;  %v2595_v33 = vpop.f32.mrb[31].mxu1  ;;  %v4604_v29 = vpack.c.bf16 %v3345_v20, %v3344_v17 }
 0x5cb   : > { %vm2043_vm8 = vcmp.gt.f32.partialorder %v2041_v36, 0.0  ;;  %v2045_v42 = vmul.f32 0.2, %v2041_v36  ;;  %v2598_v38 = vpop.f32.mrb[32].mxu1  ;;  %v3346_v33 = vld [vmem:[%s5994_s3 + $0x320] sm:$0xff] }
 0x5cc   : > { %4662 = vmatprep.subr.bf16.mxu1 %v4661_v30  ;;  %v2600_v39 = vpop.f32.mrb[33].mxu1 }
 0x5cd   : > { %v2047_v45 = vsel %vm2043_vm8, %v2041_v36, %v2045_v42  ;;  %4664 = vmatpush3.bf16.msra.mxu1 %v4661_v30  ;;  %v4665_v36 = vpack.c.bf16 %v3361_v35, %v3360_v18  ;;  %v2781_v41 = vpop.f32.mrb[34].mxu1  ;;  %v3362_v42 = vld [vmem:[%s5994_s3 + $0x360] sm:$0xff]  ;;  %v3347_v18 = vld [vmem:[%s5994_s3 + $0x328] sm:$0xff]  ;;  %v2603_v35 = vmul.f32 %v2598_v38, %v5051_v11  ;;  %v3348_v39 = vld [vmem:[%s5994_s3 + $0x330] sm:$0xff] }
 0x5ce   : > { %3726 = vmatmul.mubr.msk.f32.vlgmr.msra.gmra.mrb[4].mxu0 %vm473_vm2, %v2047_v45  ;;  %v2783_v45 = vpop.f32.mrb[35].mxu1 }
 0x5cf   : > { %4481 = vmatpush3.bf16.msra.mxu0 %v5705_v59  ;;  %3744 = vmatprep.mubr.msk.f32.mxu0 %vm473_vm2, %v2234_v24  ;;  %v3327_v59 = vld [vmem:[%s5994_s3 + $0x2c8] sm:$0xff]  ;;  %v2790_v24 = vmul.f32 %v2781_v41, %v5051_v11  ;;  %v2786_v49 = vpop.f32.mrb[36].mxu1  ;;  %v3349_v41 = vld [vmem:[%s5994_s3 + $0x338] sm:$0xff] }
 0x5d0   : > { %4483 = vmatprep.subr.bf16.mxu0 %v4482_v44  ;;  %v4539_v60 = vpack.c.bf16 %v3327_v59, %v3326_v58  ;;  %4666 = vmatprep.subr.bf16.mxu1 %v4665_v36  ;;  %v2788_v53 = vpop.f32.mrb[37].mxu1 }
 0x5d1   : > { %4668 = vmatpush3.bf16.msra.mxu1 %v4665_v36  ;;  %v2792_v47 = vadd.f32 %v2790_v24, %v5053_v12  ;;  %v4608_v36 = vpack.c.bf16 %v3347_v18, %v3346_v33  ;;  %v3369_v24 = vld [vmem:[%s4860_s10 + $0x1c8] sm:$0xff] }
 0x5d3   : > { %4485 = vmatpush3.bf16.msra.mxu0 %v4482_v44  ;;  %v3363_v44 = vld [vmem:[%s5994_s3 + $0x368] sm:$0xff]  ;;  %vm2794_vm11 = vcmp.gt.f32.partialorder %v2792_v47, 0.0 }
 0x5d4   : > { %4487 = vmatprep.subr.bf16.mxu0 %v4486_v50  ;;  %v4669_v46 = vpack.c.bf16 %v3363_v44, %v3362_v42  ;;  %v2605_v42 = vadd.f32 %v2603_v35, %v5053_v12 }
 0x5d6   : > { %4670 = vmatprep.subr.bf16.mxu1 %v4669_v46  ;;  %v2609_v44 = vmul.f32 0.2, %v2605_v42  ;;  %vm2607_vm15 = vcmp.gt.f32.partialorder %v2605_v42, 0.0 }
 0x5d7   : > { %4489 = vmatpush3.bf16.msra.mxu0 %v4486_v50  ;;  %v2791_v50 = vmul.f32 %v2786_v49, %v5051_v11  ;;  %4672 = vmatpush3.bf16.msra.mxu1 %v4669_v46 }
 0x5d8   : > { %4491 = vmatprep.subr.bf16.mxu0 %v4490_v54  ;;  %4674 = vmatprep.subr.bf16.mxu1 %v4673_v55  ;;  %v2611_v38 = vsel %vm2607_vm15, %v2605_v42, %v2609_v44 }
 0x5db   : > { %4493 = vmatpush3.bf16.msra.mxu0 %v4490_v54  ;;  %v2796_v54 = vmul.f32 0.2, %v2792_v47  ;;  %4676 = vmatpush3.bf16.msra.mxu1 %v4673_v55 }
 0x5dc   : > { %4494 = vmatprep.subr.bf16.mxu0 %v4784_v3 }
 0x5dd   : > { %v2798_v58 = vsel %vm2794_vm11, %v2792_v47, %v2796_v54 }
 0x5de   : > { %3745 = vmatmul.mubr.msk.f32.vlgmr.msra.gmra.mrb[4].mxu0 %vm473_vm2, %v2235_v56  ;;  %v2793_v56 = vadd.f32 %v2791_v50, %v5053_v12  ;;  %3801 = vmatprep.mubr.msk.f32.mxu1 %vm473_vm2, %v2798_v58 }
 0x5df   : > { %4496 = vmatpush1.bf16.msra.mxu0 %v4833_v4  ;;  %3324 = vmatprep.mubr.msk.f32.mxu0 %vm260_vm0, %v3321_v57 }
 0x5e0   : > { %4497 = vmatprep.subr.bf16.mxu0 %v4784_v3  ;;  %vm2795_vm10 = vcmp.gt.f32.partialorder %v2793_v56, 0.0  ;;  %v2797_v57 = vmul.f32 0.2, %v2793_v56 }
 0x5e2   : > { %v2799_v59 = vsel %vm2795_vm10, %v2793_v56, %v2797_v57 }
 0x5e3   : > { %4499 = vmatpush1.bf16.msra.mxu0 %v4842_v6  ;;  %3802 = vmatmul.mubr.msk.f32.vlgmr.msra.gmra.mrb[38].mxu1 %vm473_vm2, %v2799_v59 }
 0x5e4   : > { %4500 = vmatprep.subr.bf16.mxu0 %v4784_v3 }
 0x5e7   : > { %4502 = vmatpush1.bf16.msra.mxu0 %v4855_v9 }
 0x5e8   : > { %4503 = vmatprep.subr.bf16.mxu0 %v4784_v3 }
 0x5eb   : > { %4505 = vmatpush1.bf16.msra.mxu0 %v4873_v13 }
 0x5ec   : > { %4506 = vmatprep.subr.bf16.mxu0 %v4784_v3 }
 0x5ef   : > { %4508 = vmatpush1.bf16.msra.mxu0 %v4886_v16 }
 0x5f0   : > { %4509 = vmatprep.subr.bf16.mxu0 %v4784_v3 }
 0x5f3   : > { %4511 = vmatpush1.bf16.msra.mxu0 %v4898_v19 }
 0x5f4   : > { %4512 = vmatprep.subr.bf16.mxu0 %v4784_v3 }
 0x5f7   : > { %4514 = vmatpush1.bf16.msra.mxu0 %v4910_v22 }
 0x5f8   : > { %4515 = vmatprep.subr.bf16.mxu0 %v4784_v3 }
 0x5fb   : > { %4517 = vmatpush1.bf16.msra.mxu0 %v4922_v25 }
 0x5fc   : > { %4518 = vmatprep.subr.bf16.mxu0 %v4784_v3 }
 0x5ff   : > { %4520 = vmatpush1.bf16.msra.mxu0 %v4934_v28 }
 0x600   : > { %4521 = vmatprep.subr.bf16.mxu0 %v4784_v3 }
 0x603   : > { %4523 = vmatpush1.bf16.msra.mxu0 %v4946_v31 }
 0x604   : > { %4524 = vmatprep.subr.bf16.mxu0 %v4784_v3 }
 0x607   : > { %4526 = vmatpush1.bf16.msra.mxu0 %v4958_v34 }
 0x608   : > { %4527 = vmatprep.subr.bf16.mxu0 %v4784_v3 }
 0x60b   : > { %4529 = vmatpush1.bf16.msra.mxu0 %v4970_v37 }
 0x60c   : > { %4530 = vmatprep.subr.bf16.mxu0 %v4784_v3 }
 0x60f   : > { %4532 = vmatpush1.bf16.msra.mxu0 %v4982_v40 }
 0x610   : > { %4533 = vmatprep.subr.bf16.mxu0 %v4784_v3 }
 0x613   : > { %4535 = vmatpush1.bf16.msra.mxu0 %v4994_v43 }
 0x614   : > { %4536 = vmatprep.subr.bf16.mxu0 %v4784_v3 }
 0x617   : > { %4538 = vmatpush1.bf16.msra.mxu0 %v5012_v48 }
 0x618   : > { %4540 = vmatprep.subr.bf16.mxu0 %v4539_v60 }
 0x61a   : > { %2404 = vmatmul.mubr.f32.vlgmr.msra.gmra.mrb[18].mxu0 %v3320_v63 }
 0x61b   : > { %3325 = vmatprep.mubr.msk.f32.mxu0 %vm260_vm0, %v3323_v0  ;;  %4542 = vmatpush3.bf16.msra.mxu0 %v4539_v60  ;;  %v2602_v60 = vmul.f32 %v2593_v32, %v5051_v11 }
 0x61c   : > { %4544 = vmatprep.subr.bf16.mxu0 %v4543_v1 }
 0x61d   : > { %v2604_v0 = vadd.f32 %v2602_v60, %v5053_v12 }
 0x61e   : > { %2409 = vmatmul.mubr.f32.gmra.mrb[20].mxu0 %v3322_v2 }
 0x61f   : > { %4546 = vmatpush3.bf16.msra.mxu0 %v4543_v1  ;;  %v2608_v10 = vmul.f32 0.2, %v2604_v0  ;;  %vm2606_vm13 = vcmp.gt.f32.partialorder %v2604_v0, 0.0 }
 0x620   : > { %4548 = vmatprep.subr.bf16.mxu0 %v4547_v8 }
 0x621   : > { %v2610_v30 = vsel %vm2606_vm13, %v2604_v0, %v2608_v10  ;;  %v3384_v0 = vld [vmem:[%s5995_s4] ss:$0 sm:$0xff] }
 0x623   : > { %4550 = vmatpush3.bf16.msra.mxu0 %v4547_v8 }
 0x624   : > { %4552 = vmatprep.subr.bf16.mxu0 %v4551_v15 }
 0x627   : > { %4554 = vmatpush3.bf16.msra.mxu0 %v4551_v15 }
 0x628   : > { %4601 = vmatprep.subr.bf16.mxu0 %v5849_v21 }
 0x6ed   : > { %v2405_v61 = vpop.f32.mrb[18].mxu0 }
 0x6ee   : > { %v2414_v62 = vmul.f32 %v2405_v61, %v5051_v11  ;;  %v2407_v63 = vpop.f32.mrb[19].mxu0 }
 0x6f0   : > { %v2416_v1 = vadd.f32 %v2414_v62, %v5053_v12 }
 0x6f1   : > { %v2410_v2 = vpop.f32.mrb[20].mxu0 }
 0x6f2   : > { %v2420_v5 = vmul.f32 0.2, %v2416_v1  ;;  %v2415_v7 = vmul.f32 %v2410_v2, %v5051_v11  ;;  %v2412_v8 = vpop.f32.mrb[21].mxu0  ;;  %vm2418_vm12 = vcmp.gt.f32.partialorder %v2416_v1, 0.0 }
 0x6f4   : > { %v2417_v14 = vadd.f32 %v2415_v7, %v5053_v12  ;;  %v2422_v15 = vsel %vm2418_vm12, %v2416_v1, %v2420_v5 }
 0x6f5   : > { %3763 = vmatprep.mubr.msk.f32.mxu0 %vm473_vm2, %v2422_v15 }
 0x6f6   : > { %vm2419_vm14 = vcmp.gt.f32.partialorder %v2417_v14, 0.0  ;;  %v2421_v23 = vmul.f32 0.2, %v2417_v14 }
 0x6f8   : > { %v2423_v32 = vsel %vm2419_vm14, %v2417_v14, %v2421_v23 }
 0x6f9   : > { %3764 = vmatmul.mubr.msk.f32.vlgmr.msra.gmra.mrb[4].mxu0 %vm473_vm2, %v2423_v32 }
 0x6fa   : > { %4603 = vmatpush3.bf16.msra.mxu0 %v5849_v21  ;;  %3782 = vmatprep.mubr.msk.f32.mxu0 %vm473_vm2, %v2610_v30  ;;  %v4612_v21 = vpack.c.bf16 %v3349_v41, %v3348_v39 }
 0x6fb   : > { %4605 = vmatprep.subr.bf16.mxu0 %v4604_v29 }
 0x6fe   : > { %4607 = vmatpush3.bf16.msra.mxu0 %v4604_v29 }
 0x6ff   : > { %4609 = vmatprep.subr.bf16.mxu0 %v4608_v36 }
 0x702   : > { %4611 = vmatpush3.bf16.msra.mxu0 %v4608_v36 }
 0x703   : > { %4613 = vmatprep.subr.bf16.mxu0 %v4612_v21 }
 0x706   : > { %4615 = vmatpush3.bf16.msra.mxu0 %v4612_v21 }
 0x707   : > { %4677 = vmatprep.subr.bf16.mxu0 %v4784_v3 }
 0x709   : > { %3783 = vmatmul.mubr.msk.f32.vlgmr.msra.gmra.mrb[4].mxu0 %vm473_vm2, %v2611_v38 }
 0x70a   : > { %4679 = vmatpush1.bf16.msra.mxu0 %v4833_v4  ;;  %3372 = vmatprep.mubr.msk.f32.mxu0 %vm260_vm0, %v3369_v24  ;;  %v3368_v4 = vld [vmem:[%s4860_s10 + $0x1c0] sm:$0xff] }
 0x70b   : > { %4680 = vmatprep.subr.bf16.mxu0 %v4784_v3 }
 0x70e   : > { %4682 = vmatpush1.bf16.msra.mxu0 %v4842_v6  ;;  %v3371_v6 = vld [vmem:[%s4860_s10 + $0x1d8] sm:$0x3f] }
 0x70f   : > { %4683 = vmatprep.subr.bf16.mxu0 %v4784_v3 }
 0x712   : > { %4685 = vmatpush1.bf16.msra.mxu0 %v4855_v9  ;;  %v3370_v9 = vld [vmem:[%s4860_s10 + $0x1d0] sm:$0x3f] }
 0x713   : > { %4686 = vmatprep.subr.bf16.mxu0 %v4784_v3 }
 0x716   : > { %4688 = vmatpush1.bf16.msra.mxu0 %v4873_v13  ;;  %v3803_v13 = vpop.f32.mrb[38].mxu1 }
 0x717   : > { %4689 = vmatprep.subr.bf16.mxu0 %v4784_v3 }
 0x71a   : > { %4691 = vmatpush1.bf16.msra.mxu0 %v4886_v16  ;;  %v2881_v16 = vpop.f32.mrb[39].mxu1 }
 0x71b   : > { %4692 = vmatprep.subr.bf16.mxu0 %v4784_v3 }
 0x71e   : > { %4694 = vmatpush1.bf16.msra.mxu0 %v4898_v19  ;;  %v3374_v19 = vld [vmem:[%s5994_s3 + $0x380] sm:$0xff] }
 0x71f   : > { %4695 = vmatprep.subr.bf16.mxu0 %v4784_v3 }
 0x722   : > { %4697 = vmatpush1.bf16.msra.mxu0 %v4910_v22  ;;  %v3375_v22 = vld [vmem:[%s5994_s3 + $0x388] sm:$0xff] }
 0x723   : > { %4698 = vmatprep.subr.bf16.mxu0 %v4784_v3 }
 0x726   : > { %4700 = vmatpush1.bf16.msra.mxu0 %v4922_v25  ;;  %v3376_v25 = vld [vmem:[%s5994_s3 + $0x390] sm:$0xff] }
 0x727   : > { %4701 = vmatprep.subr.bf16.mxu0 %v4784_v3 }
 0x72a   : > { %4703 = vmatpush1.bf16.msra.mxu0 %v4934_v28  ;;  %v3377_v28 = vld [vmem:[%s5994_s3 + $0x398] sm:$0xff] }
 0x72b   : > { %4704 = vmatprep.subr.bf16.mxu0 %v4784_v3 }
 0x72e   : > { %4706 = vmatpush1.bf16.msra.mxu0 %v4946_v31  ;;  %v4726_v31 = vpack.c.bf16 %v3377_v28, %v3376_v25 }
 0x72f   : > { %4707 = vmatprep.subr.bf16.mxu0 %v4784_v3 }
 0x732   : > { %4709 = vmatpush1.bf16.msra.mxu0 %v4958_v34  ;;  %v3378_v34 = vld [vmem:[%s5994_s3 + $0x3a0] sm:$0xff] }
 0x733   : > { %4710 = vmatprep.subr.bf16.mxu0 %v4784_v3 }
 0x736   : > { %4712 = vmatpush1.bf16.msra.mxu0 %v4970_v37  ;;  %v3379_v37 = vld [vmem:[%s5994_s3 + $0x3a8] sm:$0xff] }
 0x737   : > { %4713 = vmatprep.subr.bf16.mxu0 %v4784_v3 }
 0x73a   : > { %4715 = vmatpush1.bf16.msra.mxu0 %v4982_v40  ;;  %v4730_v40 = vpack.c.bf16 %v3379_v37, %v3378_v34 }
 0x73b   : > { %4716 = vmatprep.subr.bf16.mxu0 %v4784_v3 }
 0x73e   : > { %4718 = vmatpush1.bf16.msra.mxu0 %v4994_v43  ;;  %v3380_v43 = vld [vmem:[%s5994_s3 + $0x3b0] sm:$0xff] }
 0x73f   : > { %4719 = vmatprep.subr.bf16.mxu0 %v4784_v3  ;;  %v4722_v3 = vpack.c.bf16 %v3375_v22, %v3374_v19 }
 0x742   : > { %4721 = vmatpush1.bf16.msra.mxu0 %v5012_v48  ;;  %v3381_v48 = vld [vmem:[%s5994_s3 + $0x3b8] sm:$0xff] }
 0x743   : > { %4723 = vmatprep.subr.bf16.mxu0 %v4722_v3  ;;  %v4734_v45 = vpack.c.bf16 %v3381_v48, %v3380_v43 }
 0x745   : > { %2968 = vmatmul.mubr.f32.vlgmr.msra.gmra.mrb[22].mxu0 %v3368_v4 }
 0x746   : > { %3373 = vmatprep.mubr.msk.f32.mxu0 %vm260_vm0, %v3371_v6  ;;  %4725 = vmatpush3.bf16.msra.mxu0 %v4722_v3 }
 0x747   : > { %4727 = vmatprep.subr.bf16.mxu0 %v4726_v31 }
 0x749   : > { %2973 = vmatmul.mubr.f32.gmra.mrb[24].mxu0 %v3370_v9 }
 0x74a   : > { %4729 = vmatpush3.bf16.msra.mxu0 %v4726_v31 }
 0x74b   : > { %4731 = vmatprep.subr.bf16.mxu0 %v4730_v40 }
 0x74e   : > { %4733 = vmatpush3.bf16.msra.mxu0 %v4730_v40 }
 0x74f   : > { %4735 = vmatprep.subr.bf16.mxu0 %v4734_v45 }
 0x752   : > { %4737 = vmatpush3.bf16.msra.mxu0 %v4734_v45 }
 0x7dc   : > { %v3784_v46 = vpop.f32.mrb[4].mxu0 }
 0x7dd   : > { %v4738_v47 = vadd.f32 %v3784_v46, %v5197_v26  ;;  %v2693_v49 = vpop.f32.mrb[5].mxu0 }
 0x7de   : > { %v4741_v50 = vadd.f32 %v2693_v49, %v5200_v27 }
 0x7df   : > { %v4739_v51 = vadd.f32 %v4738_v47, %v3803_v13 }
 0x7e0   : > { %v4742_v52 = vadd.f32 %v4741_v50, %v2881_v16 }
 0x818   : > { %v2969_v53 = vpop.f32.mrb[22].mxu0 }
 0x819   : > { %v2978_v54 = vmul.f32 %v2969_v53, %v5051_v11  ;;  %v2971_v55 = vpop.f32.mrb[23].mxu0 }
 0x81b   : > { %v2980_v56 = vadd.f32 %v2978_v54, %v5053_v12 }
 0x81c   : > { %v2974_v57 = vpop.f32.mrb[24].mxu0 }
 0x81d   : > { %v2984_v58 = vmul.f32 0.2, %v2980_v56  ;;  %v2979_v59 = vmul.f32 %v2974_v57, %v5051_v11  ;;  %v2976_v60 = vpop.f32.mrb[25].mxu0  ;;  %vm2982_vm0 = vcmp.gt.f32.partialorder %v2980_v56, 0.0 }
 0x81f   : > { %v2981_v26 = vadd.f32 %v2979_v59, %v5053_v12  ;;  %v2986_v61 = vsel %vm2982_vm0, %v2980_v56, %v2984_v58 }
 0x820   : > { %3820 = vmatprep.mubr.msk.f32.mxu0 %vm473_vm2, %v2986_v61 }
 0x821   : > { %vm2983_vm1 = vcmp.gt.f32.partialorder %v2981_v26, 0.0  ;;  %v2985_v27 = vmul.f32 0.2, %v2981_v26 }
 0x823   : > { %v2987_v62 = vsel %vm2983_vm1, %v2981_v26, %v2985_v27 }
 0x824   : > { %3821 = vmatmul.mubr.msk.f32.vlgmr.msra.gmra.mrb[26].mxu0 %vm473_vm2, %v2987_v62 }
 0x8f7   : > { %v3822_v63 = vpop.f32.mrb[26].mxu0 }
 0x8f8   : > { %v4740_v1 = vadd.f32 %v4739_v51, %v3822_v63  ;;  %v3069_v11 = vpop.f32.mrb[27].mxu0 }
 0x8f9   : > { %v4743_v12 = vadd.f32 %v4742_v52, %v3069_v11 }
 0x8fa   : > { %v3088_v2 = vadd.f32 %v4740_v1, %v3384_v0 }
 0x8fb   : > { %v3087_v5 = vadd.f32 %v4743_v12, %v3384_v0 }
 0x8fc   : > { %3092 = vst.msk [vmem:[%s224_s21 + $0x8] sm:$0x3f] %vm3091_vm3, %v3088_v2 }
 0x8fd   : > { %3090 = vst.msk [vmem:[%s224_s21] sm:$0xff] %vm3089_vm4, %v3087_v5 }
 0x8fe PF: > { %s15_s18 = sadd.s32 1, %s4782_s18  }
 0x8ff   : > { %p12_p4 = scmp.ge.s32.totalorder %s15_s18, 4  }
 0x901   :  { %14 = sbr.rel (!%p12_p4) target bundleno = 1 (0x1), region = 98 }

</bundles_post_ra>
